<compile_context>
chip_gen: v7x
topology: tpu7x:2x2x1
jax: 0.10.0
libtpu: 0.0.40
codegen_flags: <defaults>
</compile_context>

<pallas_src>
import functools

import jax
import jax.numpy as jnp
from jax import lax
from jax.experimental import pallas as pl
from jax.experimental.pallas import tpu as pltpu

SAMPLE_RATE = 16    # small synthetic sample rate for the demo
T_TILE = 512        # output time-tile width (lane-dense multiple of 128)
MXU_MIN_COUT = 8    # below this the MXU would be nearly empty -> use the VPU path


def _reverb_vpu_kernel(w_ref, x0_ref, x1_ref, o_ref, xcat_ref):
    """Tiny-channel path: per tap, SMEM-scalar * lane-shifted row FMA on the VPU.

    No im2col scratch / masked sublane stores; the MXU is skipped entirely.
    """
    B, Cin, t_tile = x0_ref.shape
    Cout = o_ref.shape[1]
    L = w_ref.shape[0] // (Cout * Cin)

    # Stage current tile + (small) right halo contiguously in VMEM.
    xcat_ref[:, :, :t_tile] = x0_ref[...]
    xcat_ref[:, :, t_tile:] = x1_ref[...]

    accs = [jnp.zeros((B, t_tile), jnp.float32) for _ in range(Cout)]
    for c in range(Cin):
        row = xcat_ref[:, c, :]                 # (B, t_tile + halo): loaded ONCE per c
        for k in range(L):                      # static unroll: L is a compile-time constant
            xs = row[:, k:k + t_tile]           # in-register lane shift (XLU slot)
            for o in range(Cout):
                # scalar read from SMEM -> scalar*vector broadcast multiply-add (VPU)
                accs[o] = accs[o] + w_ref[(o * Cin + c) * L + k] * xs
    for o in range(Cout):
        o_ref[:, o, :] = accs[o]


def _reverb_mxu_kernel(x0_ref, x1_ref, w_ref, o_ref, xcat_ref, xcol_ref):
    """Wide-channel path: batch-fused im2col + a single MXU matmul per time tile."""
    B, Cin, t_tile = x0_ref.shape
    Cout, KL = w_ref.shape
    L = KL // Cin

    # Stage current tile + (small) right halo contiguously in VMEM.
    xcat_ref[:, :, :t_tile] = x0_ref[...]
    xcat_ref[:, :, t_tile:] = x1_ref[...]

    # im2col, batch fused on the lane axis:
    #   xcol[k*Cin + c, b*t_tile + t] = x[b, c, tile_start + t + k]
    # Each store covers Cin sublanes at a 128-aligned lane offset b*t_tile.
    for b in range(B):
        row_b = xcat_ref[b, :, :]               # (Cin, t_tile + halo): loaded ONCE per b
        for k in range(L):
            xcol_ref[k * Cin:(k + 1) * Cin, b * t_tile:(b + 1) * t_tile] = \
                row_b[:, k:k + t_tile]

    # One MXU matmul per tile; N = B*t_tile (>=256) for good MXU occupancy, single
    # lane-dense (Cout, B*t_tile) store.  tanh + first-tap mask already folded into w_ref.
    o_ref[...] = jnp.dot(w_ref[...], xcol_ref[...],
                         preferred_element_type=jnp.float32).astype(o_ref.dtype)


@functools.partial(jax.jit, static_argnames=("t_tile",))
def conv_reverb_forward(x, ir, t_tile=T_TILE):
    """x: (B, Cin, T) f32, ir: (Cout, Cin, L) f32 -> (B, Cout, T - L + 1) f32."""
    B, Cin, T = x.shape
    Cout, Cin2, L = ir.shape
    assert Cin == Cin2
    T_out = T - L + 1
    assert T_out >= 1
    assert t_tile % 128 == 0, "t_tile must be a multiple of 128 (lane-dense tiles)"

    # Halo: smallest multiple of 128 that covers L-1 samples and divides t_tile
    # (so the halo block index map stays aligned to tile starts).
    halo_pad = 128 * pl.cdiv(max(L - 1, 1), 128)
    assert halo_pad <= t_tile, "IR longer than one tile: tile the tap axis too (see TODO)."
    while t_tile % halo_pad != 0:
        halo_pad += 128
    halo_blocks = t_tile // halo_pad

    # Hoisted weight prep: zero the first tap, apply tanh in the wrapper.
    mask = jnp.ones((L,), ir.dtype).at[0].set(0.0)
    w = jnp.tanh(ir) * mask                                          # (Cout, Cin, L)

    n_tiles = pl.cdiv(T_out, t_tile)
    # Pad so every tile and its right halo are valid (tail sliced off below).
    x_pad = jnp.pad(x, ((0, 0), (0, 0), (0, n_tiles * t_tile + halo_pad - T)))

    common_in_specs = [
        pl.BlockSpec((B, Cin, t_tile), lambda i: (0, 0, i)),                       # tile
        pl.BlockSpec((B, Cin, halo_pad), lambda i: (0, 0, (i + 1) * halo_blocks)), # halo
    ]
    cparams = pltpu.CompilerParams(dimension_semantics=("parallel",))

    if Cout >= MXU_MIN_COUT:
        # ---- MXU path: batch-fused im2col matmul ----
        # weight rows flattened k-major to match xcol row ordering: w2[o, k*Cin + c]
        w2 = jnp.transpose(w, (0, 2, 1)).reshape(Cout, L * Cin)
        out_pad = pl.pallas_call(
            _reverb_mxu_kernel,
            out_shape=jax.ShapeDtypeStruct((Cout, n_tiles * B * t_tile), jnp.float32),
            grid=(n_tiles,),
            in_specs=common_in_specs + [
                pl.BlockSpec((Cout, L * Cin), lambda i: (0, 0)),     # resident weights
            ],
            out_specs=pl.BlockSpec((Cout, B * t_tile), lambda i: (0, i)),
            scratch_shapes=[
                pltpu.VMEM((B, Cin, t_tile + halo_pad), jnp.float32),   # staged tile+halo
                pltpu.VMEM((L * Cin, B * t_tile), jnp.float32),         # fused im2col stack
            ],
            compiler_params=cparams,
        )(x_pad, x_pad, w2)
        # Un-shuffle the (Cout, tile, batch, t) fused layout back to (B, Cout, T_out).
        out = out_pad.reshape(Cout, n_tiles, B, t_tile)
        out = jnp.transpose(out, (2, 0, 1, 3)).reshape(B, Cout, n_tiles * t_tile)
        return out[:, :, :T_out]

    # ---- VPU path: tiny channel counts (the module default in_ch=out_ch=1) ----
    w_flat = w.reshape(Cout * Cin * L)                               # SMEM scalars
    out_pad = pl.pallas_call(
        _reverb_vpu_kernel,
        out_shape=jax.ShapeDtypeStruct((B, Cout, n_tiles * t_tile), jnp.float32),
        grid=(n_tiles,),
        in_specs=[pl.BlockSpec(memory_space=pltpu.MemorySpace.SMEM)] + common_in_specs,
        out_specs=pl.BlockSpec((B, Cout, t_tile), lambda i: (0, 0, i)),
        scratch_shapes=[
            pltpu.VMEM((B, Cin, t_tile + halo_pad), jnp.float32),       # staged tile+halo
        ],
        compiler_params=cparams,
    )(w_flat, x_pad, x_pad)
    return out_pad[:, :, :T_out]


def init_ir(key, duration=3, in_ch=1, out_ch=1):
    """Deterministic re-implementation of ConvolutionalReverb.init_ir."""
    length = duration * SAMPLE_RATE
    ir = jax.random.normal(key, (out_ch, in_ch, length), dtype=jnp.float32)
    envelop = jnp.exp(-4.0 * jnp.linspace(0.0, float(duration), length))
    ir = ir * envelop
    return ir / jnp.linalg.norm(ir, ord=2, axis=-1, keepdims=True)


def _reference(x, ir):
    """Pure-JAX reference: valid cross-correlation (F.conv1d semantics) of tanh(ir)*mask."""
    mask = jnp.ones_like(ir).at[..., 0].set(0.0)
    w_t = jnp.tanh(ir) * mask
    return lax.conv_general_dilated(
        x, w_t, window_strides=(1,), padding="VALID",
        dimension_numbers=("NCH", "OIH", "NCH"),
        precision=lax.Precision.HIGHEST)


if __name__ == "__main__":
    key = jax.random.PRNGKey(0)
    k_ir1, k_x1, k_ir2, k_x2 = jax.random.split(key, 4)

    # Case 1: module defaults (in_ch=1, out_ch=1, duration=3) -> VPU path, L = 48 taps.
    ir1 = init_ir(k_ir1, duration=3, in_ch=1, out_ch=1)              # (1, 1, 48)
    x1 = jax.random.normal(k_x1, (2, 1, 2048), dtype=jnp.float32)    # n_tiles = 4
    out1 = jax.block_until_ready(conv_reverb_forward(x1, ir1))
    ref1 = _reference(x1, ir1)
    assert out1.shape == ref1.shape, (out1.shape, ref1.shape)
    err1 = float(jnp.max(jnp.abs(out1 - ref1)))

    # Case 2: wider channel counts -> batch-fused im2col MXU path.
    ir2 = init_ir(k_ir2, duration=3, in_ch=2, out_ch=8)              # (8, 2, 48)
    x2 = jax.random.normal(k_x2, (2, 2, 2048), dtype=jnp.float32)
    out2 = jax.block_until_ready(conv_reverb_forward(x2, ir2))
    ref2 = _reference(x2, ir2)
    assert out2.shape == ref2.shape, (out2.shape, ref2.shape)
    err2 = float(jnp.max(jnp.abs(out2 - ref2)))

    # Headroom for MXU f32 contraction precision (default MXU precision vs. HIGHEST in the
    # reference); observed errors are far smaller on both paths.
    assert err1 < 1e-2 and err2 < 1e-2, (err1, err2)
    print("KERNEL_OK")
</pallas_src>

<mosaic_0001>
module attributes {stable_mosaic.version = 11 : i64} {
  func.func @_reverb_vpu_kernel(%arg0: i32, %arg1: memref<48xf32, #tpu.memory_space<smem>>, %arg2: memref<2x1x512xf32, #tpu.memory_space<vmem>>, %arg3: memref<2x1x128xf32, #tpu.memory_space<vmem>>, %arg4: memref<2x1x512xf32, #tpu.memory_space<vmem>>, %arg5: memref<2x1x640xf32, #tpu.memory_space<vmem>>) attributes {dimension_semantics = [#tpu.dimension_semantics<parallel>], iteration_bounds = array<i64: 4>, scalar_prefetch = 0 : i64, scratch_operands = 1 : i64, tpu.core_type = #tpu.core_type<tc>, window_params = [{transform_indices = @transform_0, window_bounds = array<i64: 48>}, {transform_indices = @transform_1, window_bounds = array<i64: 2, 1, 512>}, {transform_indices = @transform_2, window_bounds = array<i64: 2, 1, 128>}, {transform_indices = @transform_3, window_bounds = array<i64: 2, 1, 512>}]} {
    %c0 = arith.constant 0 : index
    %c0_0 = arith.constant 0 : index
    %c0_1 = arith.constant 0 : index
    %0 = vector.load %arg2[%c0, %c0_0, %c0_1] : memref<2x1x512xf32, #tpu.memory_space<vmem>>, vector<2x1x512xf32>
    %c0_2 = arith.constant 0 : index
    %c0_3 = arith.constant 0 : index
    %c0_4 = arith.constant 0 : index
    %1 = vector.load %arg5[%c0_2, %c0_3, %c0_4] : memref<2x1x640xf32, #tpu.memory_space<vmem>>, vector<2x1x512xf32>
    tpu.vector_store %arg5[%c0_2, %c0_3, %c0_4], %0 {strides = array<i32>} : memref<2x1x640xf32, #tpu.memory_space<vmem>>, vector<2x1x512xf32>,
    %c0_5 = arith.constant 0 : index
    %c0_6 = arith.constant 0 : index
    %c0_7 = arith.constant 0 : index
    %2 = vector.load %arg3[%c0_5, %c0_6, %c0_7] : memref<2x1x128xf32, #tpu.memory_space<vmem>>, vector<2x1x128xf32>
    %c0_8 = arith.constant 0 : index
    %c0_9 = arith.constant 0 : index
    %c512 = arith.constant 512 : index
    %3 = vector.load %arg5[%c0_8, %c0_9, %c512] : memref<2x1x640xf32, #tpu.memory_space<vmem>>, vector<2x1x128xf32>
    tpu.vector_store %arg5[%c0_8, %c0_9, %c512], %2 {strides = array<i32>} : memref<2x1x640xf32, #tpu.memory_space<vmem>>, vector<2x1x128xf32>,
    %cst = arith.constant 0.000000e+00 : f32
    %4 = vector.broadcast %cst : f32 to vector<2x512xf32>
    %c0_10 = arith.constant 0 : index
    %c0_11 = arith.constant 0 : index
    %c0_12 = arith.constant 0 : index
    %5 = vector.load %arg5[%c0_10, %c0_11, %c0_12] : memref<2x1x640xf32, #tpu.memory_space<vmem>>, vector<2x1x640xf32>
    %6 = vector.shape_cast %5 : vector<2x1x640xf32> to vector<2x640xf32>
    %7 = vector.extract_strided_slice %6 {offsets = [0, 0], sizes = [2, 512], strides = [1, 1]} : vector<2x640xf32> to vector<2x512xf32>
    %c0_13 = arith.constant 0 : index
    %8 = memref.load %arg1[%c0_13] : memref<48xf32, #tpu.memory_space<smem>>
    %9 = vector.broadcast %8 : f32 to vector<2x512xf32>
    %10 = arith.mulf %9, %7 : vector<2x512xf32>
    %11 = arith.addf %4, %10 : vector<2x512xf32>
    %12 = vector.extract_strided_slice %6 {offsets = [0, 1], sizes = [2, 512], strides = [1, 1]} : vector<2x640xf32> to vector<2x512xf32>
    %c1 = arith.constant 1 : index
    %13 = memref.load %arg1[%c1] : memref<48xf32, #tpu.memory_space<smem>>
    %14 = vector.broadcast %13 : f32 to vector<2x512xf32>
    %15 = arith.mulf %14, %12 : vector<2x512xf32>
    %16 = arith.addf %11, %15 : vector<2x512xf32>
    %17 = vector.extract_strided_slice %6 {offsets = [0, 2], sizes = [2, 512], strides = [1, 1]} : vector<2x640xf32> to vector<2x512xf32>
    %c2 = arith.constant 2 : index
    %18 = memref.load %arg1[%c2] : memref<48xf32, #tpu.memory_space<smem>>
    %19 = vector.broadcast %18 : f32 to vector<2x512xf32>
    %20 = arith.mulf %19, %17 : vector<2x512xf32>
    %21 = arith.addf %16, %20 : vector<2x512xf32>
    %22 = vector.extract_strided_slice %6 {offsets = [0, 3], sizes = [2, 512], strides = [1, 1]} : vector<2x640xf32> to vector<2x512xf32>
    %c3 = arith.constant 3 : index
    %23 = memref.load %arg1[%c3] : memref<48xf32, #tpu.memory_space<smem>>
    %24 = vector.broadcast %23 : f32 to vector<2x512xf32>
    %25 = arith.mulf %24, %22 : vector<2x512xf32>
    %26 = arith.addf %21, %25 : vector<2x512xf32>
    %27 = vector.extract_strided_slice %6 {offsets = [0, 4], sizes = [2, 512], strides = [1, 1]} : vector<2x640xf32> to vector<2x512xf32>
    %c4 = arith.constant 4 : index
    %28 = memref.load %arg1[%c4] : memref<48xf32, #tpu.memory_space<smem>>
    %29 = vector.broadcast %28 : f32 to vector<2x512xf32>
    %30 = arith.mulf %29, %27 : vector<2x512xf32>
    %31 = arith.addf %26, %30 : vector<2x512xf32>
    %32 = vector.extract_strided_slice %6 {offsets = [0, 5], sizes = [2, 512], strides = [1, 1]} : vector<2x640xf32> to vector<2x512xf32>
    %c5 = arith.constant 5 : index
    %33 = memref.load %arg1[%c5] : memref<48xf32, #tpu.memory_space<smem>>
    %34 = vector.broadcast %33 : f32 to vector<2x512xf32>
    %35 = arith.mulf %34, %32 : vector<2x512xf32>
    %36 = arith.addf %31, %35 : vector<2x512xf32>
    %37 = vector.extract_strided_slice %6 {offsets = [0, 6], sizes = [2, 512], strides = [1, 1]} : vector<2x640xf32> to vector<2x512xf32>
    %c6 = arith.constant 6 : index
    %38 = memref.load %arg1[%c6] : memref<48xf32, #tpu.memory_space<smem>>
    %39 = vector.broadcast %38 : f32 to vector<2x512xf32>
    %40 = arith.mulf %39, %37 : vector<2x512xf32>
    %41 = arith.addf %36, %40 : vector<2x512xf32>
    %42 = vector.extract_strided_slice %6 {offsets = [0, 7], sizes = [2, 512], strides = [1, 1]} : vector<2x640xf32> to vector<2x512xf32>
    %c7 = arith.constant 7 : index
    %43 = memref.load %arg1[%c7] : memref<48xf32, #tpu.memory_space<smem>>
    %44 = vector.broadcast %43 : f32 to vector<2x512xf32>
    %45 = arith.mulf %44, %42 : vector<2x512xf32>
    %46 = arith.addf %41, %45 : vector<2x512xf32>
    %47 = vector.extract_strided_slice %6 {offsets = [0, 8], sizes = [2, 512], strides = [1, 1]} : vector<2x640xf32> to vector<2x512xf32>
    %c8 = arith.constant 8 : index
    %48 = memref.load %arg1[%c8] : memref<48xf32, #tpu.memory_space<smem>>
    %49 = vector.broadcast %48 : f32 to vector<2x512xf32>
    %50 = arith.mulf %49, %47 : vector<2x512xf32>
    %51 = arith.addf %46, %50 : vector<2x512xf32>
    %52 = vector.extract_strided_slice %6 {offsets = [0, 9], sizes = [2, 512], strides = [1, 1]} : vector<2x640xf32> to vector<2x512xf32>
    %c9 = arith.constant 9 : index
    %53 = memref.load %arg1[%c9] : memref<48xf32, #tpu.memory_space<smem>>
    %54 = vector.broadcast %53 : f32 to vector<2x512xf32>
    %55 = arith.mulf %54, %52 : vector<2x512xf32>
    %56 = arith.addf %51, %55 : vector<2x512xf32>
    %57 = vector.extract_strided_slice %6 {offsets = [0, 10], sizes = [2, 512], strides = [1, 1]} : vector<2x640xf32> to vector<2x512xf32>
    %c10 = arith.constant 10 : index
    %58 = memref.load %arg1[%c10] : memref<48xf32, #tpu.memory_space<smem>>
    %59 = vector.broadcast %58 : f32 to vector<2x512xf32>
    %60 = arith.mulf %59, %57 : vector<2x512xf32>
    %61 = arith.addf %56, %60 : vector<2x512xf32>
    %62 = vector.extract_strided_slice %6 {offsets = [0, 11], sizes = [2, 512], strides = [1, 1]} : vector<2x640xf32> to vector<2x512xf32>
    %c11 = arith.constant 11 : index
    %63 = memref.load %arg1[%c11] : memref<48xf32, #tpu.memory_space<smem>>
    %64 = vector.broadcast %63 : f32 to vector<2x512xf32>
    %65 = arith.mulf %64, %62 : vector<2x512xf32>
    %66 = arith.addf %61, %65 : vector<2x512xf32>
    %67 = vector.extract_strided_slice %6 {offsets = [0, 12], sizes = [2, 512], strides = [1, 1]} : vector<2x640xf32> to vector<2x512xf32>
    %c12 = arith.constant 12 : index
    %68 = memref.load %arg1[%c12] : memref<48xf32, #tpu.memory_space<smem>>
    %69 = vector.broadcast %68 : f32 to vector<2x512xf32>
    %70 = arith.mulf %69, %67 : vector<2x512xf32>
    %71 = arith.addf %66, %70 : vector<2x512xf32>
    %72 = vector.extract_strided_slice %6 {offsets = [0, 13], sizes = [2, 512], strides = [1, 1]} : vector<2x640xf32> to vector<2x512xf32>
    %c13 = arith.constant 13 : index
    %73 = memref.load %arg1[%c13] : memref<48xf32, #tpu.memory_space<smem>>
    %74 = vector.broadcast %73 : f32 to vector<2x512xf32>
    %75 = arith.mulf %74, %72 : vector<2x512xf32>
    %76 = arith.addf %71, %75 : vector<2x512xf32>
    %77 = vector.extract_strided_slice %6 {offsets = [0, 14], sizes = [2, 512], strides = [1, 1]} : vector<2x640xf32> to vector<2x512xf32>
    %c14 = arith.constant 14 : index
    %78 = memref.load %arg1[%c14] : memref<48xf32, #tpu.memory_space<smem>>
    %79 = vector.broadcast %78 : f32 to vector<2x512xf32>
    %80 = arith.mulf %79, %77 : vector<2x512xf32>
    %81 = arith.addf %76, %80 : vector<2x512xf32>
    %82 = vector.extract_strided_slice %6 {offsets = [0, 15], sizes = [2, 512], strides = [1, 1]} : vector<2x640xf32> to vector<2x512xf32>
    %c15 = arith.constant 15 : index
    %83 = memref.load %arg1[%c15] : memref<48xf32, #tpu.memory_space<smem>>
    %84 = vector.broadcast %83 : f32 to vector<2x512xf32>
    %85 = arith.mulf %84, %82 : vector<2x512xf32>
    %86 = arith.addf %81, %85 : vector<2x512xf32>
    %87 = vector.extract_strided_slice %6 {offsets = [0, 16], sizes = [2, 512], strides = [1, 1]} : vector<2x640xf32> to vector<2x512xf32>
    %c16 = arith.constant 16 : index
    %88 = memref.load %arg1[%c16] : memref<48xf32, #tpu.memory_space<smem>>
    %89 = vector.broadcast %88 : f32 to vector<2x512xf32>
    %90 = arith.mulf %89, %87 : vector<2x512xf32>
    %91 = arith.addf %86, %90 : vector<2x512xf32>
    %92 = vector.extract_strided_slice %6 {offsets = [0, 17], sizes = [2, 512], strides = [1, 1]} : vector<2x640xf32> to vector<2x512xf32>
    %c17 = arith.constant 17 : index
    %93 = memref.load %arg1[%c17] : memref<48xf32, #tpu.memory_space<smem>>
    %94 = vector.broadcast %93 : f32 to vector<2x512xf32>
    %95 = arith.mulf %94, %92 : vector<2x512xf32>
    %96 = arith.addf %91, %95 : vector<2x512xf32>
    %97 = vector.extract_strided_slice %6 {offsets = [0, 18], sizes = [2, 512], strides = [1, 1]} : vector<2x640xf32> to vector<2x512xf32>
    %c18 = arith.constant 18 : index
    %98 = memref.load %arg1[%c18] : memref<48xf32, #tpu.memory_space<smem>>
    %99 = vector.broadcast %98 : f32 to vector<2x512xf32>
    %100 = arith.mulf %99, %97 : vector<2x512xf32>
    %101 = arith.addf %96, %100 : vector<2x512xf32>
    %102 = vector.extract_strided_slice %6 {offsets = [0, 19], sizes = [2, 512], strides = [1, 1]} : vector<2x640xf32> to vector<2x512xf32>
    %c19 = arith.constant 19 : index
    %103 = memref.load %arg1[%c19] : memref<48xf32, #tpu.memory_space<smem>>
    %104 = vector.broadcast %103 : f32 to vector<2x512xf32>
    %105 = arith.mulf %104, %102 : vector<2x512xf32>
    %106 = arith.addf %101, %105 : vector<2x512xf32>
    %107 = vector.extract_strided_slice %6 {offsets = [0, 20], sizes = [2, 512], strides = [1, 1]} : vector<2x640xf32> to vector<2x512xf32>
    %c20 = arith.constant 20 : index
    %108 = memref.load %arg1[%c20] : memref<48xf32, #tpu.memory_space<smem>>
    %109 = vector.broadcast %108 : f32 to vector<2x512xf32>
    %110 = arith.mulf %109, %107 : vector<2x512xf32>
    %111 = arith.addf %106, %110 : vector<2x512xf32>
    %112 = vector.extract_strided_slice %6 {offsets = [0, 21], sizes = [2, 512], strides = [1, 1]} : vector<2x640xf32> to vector<2x512xf32>
    %c21 = arith.constant 21 : index
    %113 = memref.load %arg1[%c21] : memref<48xf32, #tpu.memory_space<smem>>
    %114 = vector.broadcast %113 : f32 to vector<2x512xf32>
    %115 = arith.mulf %114, %112 : vector<2x512xf32>
    %116 = arith.addf %111, %115 : vector<2x512xf32>
    %117 = vector.extract_strided_slice %6 {offsets = [0, 22], sizes = [2, 512], strides = [1, 1]} : vector<2x640xf32> to vector<2x512xf32>
    %c22 = arith.constant 22 : index
    %118 = memref.load %arg1[%c22] : memref<48xf32, #tpu.memory_space<smem>>
    %119 = vector.broadcast %118 : f32 to vector<2x512xf32>
    %120 = arith.mulf %119, %117 : vector<2x512xf32>
    %121 = arith.addf %116, %120 : vector<2x512xf32>
    %122 = vector.extract_strided_slice %6 {offsets = [0, 23], sizes = [2, 512], strides = [1, 1]} : vector<2x640xf32> to vector<2x512xf32>
    %c23 = arith.constant 23 : index
    %123 = memref.load %arg1[%c23] : memref<48xf32, #tpu.memory_space<smem>>
    %124 = vector.broadcast %123 : f32 to vector<2x512xf32>
    %125 = arith.mulf %124, %122 : vector<2x512xf32>
    %126 = arith.addf %121, %125 : vector<2x512xf32>
    %127 = vector.extract_strided_slice %6 {offsets = [0, 24], sizes = [2, 512], strides = [1, 1]} : vector<2x640xf32> to vector<2x512xf32>
    %c24 = arith.constant 24 : index
    %128 = memref.load %arg1[%c24] : memref<48xf32, #tpu.memory_space<smem>>
    %129 = vector.broadcast %128 : f32 to vector<2x512xf32>
    %130 = arith.mulf %129, %127 : vector<2x512xf32>
    %131 = arith.addf %126, %130 : vector<2x512xf32>
    %132 = vector.extract_strided_slice %6 {offsets = [0, 25], sizes = [2, 512], strides = [1, 1]} : vector<2x640xf32> to vector<2x512xf32>
    %c25 = arith.constant 25 : index
    %133 = memref.load %arg1[%c25] : memref<48xf32, #tpu.memory_space<smem>>
    %134 = vector.broadcast %133 : f32 to vector<2x512xf32>
    %135 = arith.mulf %134, %132 : vector<2x512xf32>
    %136 = arith.addf %131, %135 : vector<2x512xf32>
    %137 = vector.extract_strided_slice %6 {offsets = [0, 26], sizes = [2, 512], strides = [1, 1]} : vector<2x640xf32> to vector<2x512xf32>
    %c26 = arith.constant 26 : index
    %138 = memref.load %arg1[%c26] : memref<48xf32, #tpu.memory_space<smem>>
    %139 = vector.broadcast %138 : f32 to vector<2x512xf32>
    %140 = arith.mulf %139, %137 : vector<2x512xf32>
    %141 = arith.addf %136, %140 : vector<2x512xf32>
    %142 = vector.extract_strided_slice %6 {offsets = [0, 27], sizes = [2, 512], strides = [1, 1]} : vector<2x640xf32> to vector<2x512xf32>
    %c27 = arith.constant 27 : index
    %143 = memref.load %arg1[%c27] : memref<48xf32, #tpu.memory_space<smem>>
    %144 = vector.broadcast %143 : f32 to vector<2x512xf32>
    %145 = arith.mulf %144, %142 : vector<2x512xf32>
    %146 = arith.addf %141, %145 : vector<2x512xf32>
    %147 = vector.extract_strided_slice %6 {offsets = [0, 28], sizes = [2, 512], strides = [1, 1]} : vector<2x640xf32> to vector<2x512xf32>
    %c28 = arith.constant 28 : index
    %148 = memref.load %arg1[%c28] : memref<48xf32, #tpu.memory_space<smem>>
    %149 = vector.broadcast %148 : f32 to vector<2x512xf32>
    %150 = arith.mulf %149, %147 : vector<2x512xf32>
    %151 = arith.addf %146, %150 : vector<2x512xf32>
    %152 = vector.extract_strided_slice %6 {offsets = [0, 29], sizes = [2, 512], strides = [1, 1]} : vector<2x640xf32> to vector<2x512xf32>
    %c29 = arith.constant 29 : index
    %153 = memref.load %arg1[%c29] : memref<48xf32, #tpu.memory_space<smem>>
    %154 = vector.broadcast %153 : f32 to vector<2x512xf32>
    %155 = arith.mulf %154, %152 : vector<2x512xf32>
    %156 = arith.addf %151, %155 : vector<2x512xf32>
    %157 = vector.extract_strided_slice %6 {offsets = [0, 30], sizes = [2, 512], strides = [1, 1]} : vector<2x640xf32> to vector<2x512xf32>
    %c30 = arith.constant 30 : index
    %158 = memref.load %arg1[%c30] : memref<48xf32, #tpu.memory_space<smem>>
    %159 = vector.broadcast %158 : f32 to vector<2x512xf32>
    %160 = arith.mulf %159, %157 : vector<2x512xf32>
    %161 = arith.addf %156, %160 : vector<2x512xf32>
    %162 = vector.extract_strided_slice %6 {offsets = [0, 31], sizes = [2, 512], strides = [1, 1]} : vector<2x640xf32> to vector<2x512xf32>
    %c31 = arith.constant 31 : index
    %163 = memref.load %arg1[%c31] : memref<48xf32, #tpu.memory_space<smem>>
    %164 = vector.broadcast %163 : f32 to vector<2x512xf32>
    %165 = arith.mulf %164, %162 : vector<2x512xf32>
    %166 = arith.addf %161, %165 : vector<2x512xf32>
    %167 = vector.extract_strided_slice %6 {offsets = [0, 32], sizes = [2, 512], strides = [1, 1]} : vector<2x640xf32> to vector<2x512xf32>
    %c32 = arith.constant 32 : index
    %168 = memref.load %arg1[%c32] : memref<48xf32, #tpu.memory_space<smem>>
    %169 = vector.broadcast %168 : f32 to vector<2x512xf32>
    %170 = arith.mulf %169, %167 : vector<2x512xf32>
    %171 = arith.addf %166, %170 : vector<2x512xf32>
    %172 = vector.extract_strided_slice %6 {offsets = [0, 33], sizes = [2, 512], strides = [1, 1]} : vector<2x640xf32> to vector<2x512xf32>
    %c33 = arith.constant 33 : index
    %173 = memref.load %arg1[%c33] : memref<48xf32, #tpu.memory_space<smem>>
    %174 = vector.broadcast %173 : f32 to vector<2x512xf32>
    %175 = arith.mulf %174, %172 : vector<2x512xf32>
    %176 = arith.addf %171, %175 : vector<2x512xf32>
    %177 = vector.extract_strided_slice %6 {offsets = [0, 34], sizes = [2, 512], strides = [1, 1]} : vector<2x640xf32> to vector<2x512xf32>
    %c34 = arith.constant 34 : index
    %178 = memref.load %arg1[%c34] : memref<48xf32, #tpu.memory_space<smem>>
    %179 = vector.broadcast %178 : f32 to vector<2x512xf32>
    %180 = arith.mulf %179, %177 : vector<2x512xf32>
    %181 = arith.addf %176, %180 : vector<2x512xf32>
    %182 = vector.extract_strided_slice %6 {offsets = [0, 35], sizes = [2, 512], strides = [1, 1]} : vector<2x640xf32> to vector<2x512xf32>
    %c35 = arith.constant 35 : index
    %183 = memref.load %arg1[%c35] : memref<48xf32, #tpu.memory_space<smem>>
    %184 = vector.broadcast %183 : f32 to vector<2x512xf32>
    %185 = arith.mulf %184, %182 : vector<2x512xf32>
    %186 = arith.addf %181, %185 : vector<2x512xf32>
    %187 = vector.extract_strided_slice %6 {offsets = [0, 36], sizes = [2, 512], strides = [1, 1]} : vector<2x640xf32> to vector<2x512xf32>
    %c36 = arith.constant 36 : index
    %188 = memref.load %arg1[%c36] : memref<48xf32, #tpu.memory_space<smem>>
    %189 = vector.broadcast %188 : f32 to vector<2x512xf32>
    %190 = arith.mulf %189, %187 : vector<2x512xf32>
    %191 = arith.addf %186, %190 : vector<2x512xf32>
    %192 = vector.extract_strided_slice %6 {offsets = [0, 37], sizes = [2, 512], strides = [1, 1]} : vector<2x640xf32> to vector<2x512xf32>
    %c37 = arith.constant 37 : index
    %193 = memref.load %arg1[%c37] : memref<48xf32, #tpu.memory_space<smem>>
    %194 = vector.broadcast %193 : f32 to vector<2x512xf32>
    %195 = arith.mulf %194, %192 : vector<2x512xf32>
    %196 = arith.addf %191, %195 : vector<2x512xf32>
    %197 = vector.extract_strided_slice %6 {offsets = [0, 38], sizes = [2, 512], strides = [1, 1]} : vector<2x640xf32> to vector<2x512xf32>
    %c38 = arith.constant 38 : index
    %198 = memref.load %arg1[%c38] : memref<48xf32, #tpu.memory_space<smem>>
    %199 = vector.broadcast %198 : f32 to vector<2x512xf32>
    %200 = arith.mulf %199, %197 : vector<2x512xf32>
    %201 = arith.addf %196, %200 : vector<2x512xf32>
    %202 = vector.extract_strided_slice %6 {offsets = [0, 39], sizes = [2, 512], strides = [1, 1]} : vector<2x640xf32> to vector<2x512xf32>
    %c39 = arith.constant 39 : index
    %203 = memref.load %arg1[%c39] : memref<48xf32, #tpu.memory_space<smem>>
    %204 = vector.broadcast %203 : f32 to vector<2x512xf32>
    %205 = arith.mulf %204, %202 : vector<2x512xf32>
    %206 = arith.addf %201, %205 : vector<2x512xf32>
    %207 = vector.extract_strided_slice %6 {offsets = [0, 40], sizes = [2, 512], strides = [1, 1]} : vector<2x640xf32> to vector<2x512xf32>
    %c40 = arith.constant 40 : index
    %208 = memref.load %arg1[%c40] : memref<48xf32, #tpu.memory_space<smem>>
    %209 = vector.broadcast %208 : f32 to vector<2x512xf32>
    %210 = arith.mulf %209, %207 : vector<2x512xf32>
    %211 = arith.addf %206, %210 : vector<2x512xf32>
    %212 = vector.extract_strided_slice %6 {offsets = [0, 41], sizes = [2, 512], strides = [1, 1]} : vector<2x640xf32> to vector<2x512xf32>
    %c41 = arith.constant 41 : index
    %213 = memref.load %arg1[%c41] : memref<48xf32, #tpu.memory_space<smem>>
    %214 = vector.broadcast %213 : f32 to vector<2x512xf32>
    %215 = arith.mulf %214, %212 : vector<2x512xf32>
    %216 = arith.addf %211, %215 : vector<2x512xf32>
    %217 = vector.extract_strided_slice %6 {offsets = [0, 42], sizes = [2, 512], strides = [1, 1]} : vector<2x640xf32> to vector<2x512xf32>
    %c42 = arith.constant 42 : index
    %218 = memref.load %arg1[%c42] : memref<48xf32, #tpu.memory_space<smem>>
    %219 = vector.broadcast %218 : f32 to vector<2x512xf32>
    %220 = arith.mulf %219, %217 : vector<2x512xf32>
    %221 = arith.addf %216, %220 : vector<2x512xf32>
    %222 = vector.extract_strided_slice %6 {offsets = [0, 43], sizes = [2, 512], strides = [1, 1]} : vector<2x640xf32> to vector<2x512xf32>
    %c43 = arith.constant 43 : index
    %223 = memref.load %arg1[%c43] : memref<48xf32, #tpu.memory_space<smem>>
    %224 = vector.broadcast %223 : f32 to vector<2x512xf32>
    %225 = arith.mulf %224, %222 : vector<2x512xf32>
    %226 = arith.addf %221, %225 : vector<2x512xf32>
    %227 = vector.extract_strided_slice %6 {offsets = [0, 44], sizes = [2, 512], strides = [1, 1]} : vector<2x640xf32> to vector<2x512xf32>
    %c44 = arith.constant 44 : index
    %228 = memref.load %arg1[%c44] : memref<48xf32, #tpu.memory_space<smem>>
    %229 = vector.broadcast %228 : f32 to vector<2x512xf32>
    %230 = arith.mulf %229, %227 : vector<2x512xf32>
    %231 = arith.addf %226, %230 : vector<2x512xf32>
    %232 = vector.extract_strided_slice %6 {offsets = [0, 45], sizes = [2, 512], strides = [1, 1]} : vector<2x640xf32> to vector<2x512xf32>
    %c45 = arith.constant 45 : index
    %233 = memref.load %arg1[%c45] : memref<48xf32, #tpu.memory_space<smem>>
    %234 = vector.broadcast %233 : f32 to vector<2x512xf32>
    %235 = arith.mulf %234, %232 : vector<2x512xf32>
    %236 = arith.addf %231, %235 : vector<2x512xf32>
    %237 = vector.extract_strided_slice %6 {offsets = [0, 46], sizes = [2, 512], strides = [1, 1]} : vector<2x640xf32> to vector<2x512xf32>
    %c46 = arith.constant 46 : index
    %238 = memref.load %arg1[%c46] : memref<48xf32, #tpu.memory_space<smem>>
    %239 = vector.broadcast %238 : f32 to vector<2x512xf32>
    %240 = arith.mulf %239, %237 : vector<2x512xf32>
    %241 = arith.addf %236, %240 : vector<2x512xf32>
    %242 = vector.extract_strided_slice %6 {offsets = [0, 47], sizes = [2, 512], strides = [1, 1]} : vector<2x640xf32> to vector<2x512xf32>
    %c47 = arith.constant 47 : index
    %243 = memref.load %arg1[%c47] : memref<48xf32, #tpu.memory_space<smem>>
    %244 = vector.broadcast %243 : f32 to vector<2x512xf32>
    %245 = arith.mulf %244, %242 : vector<2x512xf32>
    %246 = arith.addf %241, %245 : vector<2x512xf32>
    %c0_14 = arith.constant 0 : index
    %c0_15 = arith.constant 0 : index
    %c0_16 = arith.constant 0 : index
    %247 = vector.load %arg4[%c0_14, %c0_15, %c0_16] : memref<2x1x512xf32, #tpu.memory_space<vmem>>, vector<2x1x512xf32>
    %248 = vector.shape_cast %247 : vector<2x1x512xf32> to vector<2x512xf32>
    %249 = vector.shape_cast %246 : vector<2x512xf32> to vector<2x1x512xf32>
    tpu.vector_store %arg4[%c0_14, %c0_15, %c0_16], %249 {strides = array<i32>} : memref<2x1x512xf32, #tpu.memory_space<vmem>>, vector<2x1x512xf32>,
    return
  }
  func.func @transform_0(%arg0: i32) -> i32 {
    %c0_i32 = arith.constant 0 : i32
    %c0_i32_0 = arith.constant 0 : i32
    return %c0_i32 : i32
  }
  func.func @transform_1(%arg0: i32) -> (i32, i32, i32) {
    %c0_i32 = arith.constant 0 : i32
    %c0_i32_0 = arith.constant 0 : i32
    %c0_i32_1 = arith.constant 0 : i32
    return %c0_i32, %c0_i32_0, %arg0 : i32, i32, i32
  }
  func.func @transform_2(%arg0: i32) -> (i32, i32, i32) {
    %c1_i32 = arith.constant 1 : i32
    %0 = arith.addi %arg0, %c1_i32 : i32
    %c4_i32 = arith.constant 4 : i32
    %1 = arith.muli %0, %c4_i32 : i32
    %c0_i32 = arith.constant 0 : i32
    %c0_i32_0 = arith.constant 0 : i32
    %c0_i32_1 = arith.constant 0 : i32
    return %c0_i32, %c0_i32_0, %1 : i32, i32, i32
  }
  func.func @transform_3(%arg0: i32) -> (i32, i32, i32) {
    %c0_i32 = arith.constant 0 : i32
    %c0_i32_0 = arith.constant 0 : i32
    %c0_i32_1 = arith.constant 0 : i32
    return %c0_i32, %c0_i32_0, %arg0 : i32, i32, i32
  }
}

</mosaic_0001>

<bundles_post_ra>
// kernel: conv_reverb_forward.1
= control target key start
LH: loop header
LB: loop body
LE: loop exit
PB: predicated region body
PF: predicated region fallthrough
CT: control target
= control target key end

     0   :  { %s3339_s0 = inlined_call_operand.vmem [shape: f32[48], index: 0, kind: input, shape index: {}]   ;;  %s3340_s1 = inlined_call_operand.vmem [shape: f32[2,1,2176], index: 1, kind: input, shape index: {}, may-alias: {1,2}]   ;;  %s3341_s2 = inlined_call_operand.vmem [shape: f32[2,1,2176], index: 2, kind: input, shape index: {}, may-alias: {1,2}]   ;;  %s3342_s3 = inlined_call_operand.hbm [shape: f32[2,1,2048], index: 3, kind: output, shape index: {}]  }
   0x1   :  { %3349 = sst [smem:[#allocation16_spill]] %s3339_s0 }
   0x2   :  { %3350 = sst [smem:[#allocation17_spill]] %s3340_s1 }
   0x3   :  { %8 = vsyncpa [#allocation5], 0 }
   0x4   :  { %9 = vsyncpa [#allocation4], 0 }
   0x5   :  { %11 = vsyncpa [#allocation4 + $0x1], 0  ;;  %s2430_s12 = smov 0   ;;  %s2432_s13 = smov 0  }
   0x6   :  { %s2434_s14 = smov 0   ;;  %s2436_s15 = smov 0  }
   0x7   :  { %s2438_s16 = smov 0   ;;  %s2440_s17 = smov 0  }
   0x8 LB: > { %3351 = sst [smem:[#allocation11_spill]] %s2286_s16  ;;  %s2461_s18 = sadd.s32 4294967295, %s2290_s17   ;;  %s2290_s17 = sphi %s2440_s17, %s3380_s17   ;;  %s2286_s16 = sphi %s2438_s16, %s3383_s16   ;;  %s2282_s15 = sphi %s2436_s15, %s3387_s15   ;;  %s2278_s14 = sphi %s2434_s14, %s3386_s14   ;;  %s2274_s13 = sphi %s2432_s13, %s3385_s13   ;;  %s2270_s12 = sphi %s2430_s12, %s3384_s12  }
   0x9   : > { %s1780_s19 = sadd.s32 4294967294, %s2290_s17   ;;  %s2465_s20 = sadd.s32 1, %s2290_s17  }
   0xa   : > { %3352 = sst [smem:[#allocation12_spill]] %s2465_s20  ;;  %s45_s21 = sadd.s32 1, %s2286_s16 }
   0xb   : > { %s42_s22 = ssub.s32 %s2290_s17, %s2465_s20  ;;  %p52_p0 = scmp.ne.s32.totalorder %s2286_s16, %s2282_s15 }
   0xc   : > { %p43_p1 = scmp.eq.s32.totalorder %s42_s22, 0  ;;  %p53_p2 = scmp.eq.s32.totalorder %s2290_s17, 0 }
   0xd   : > { %s2474_s23 = sshll.u32 %s2290_s17, 2  ;;  %s75_s24 = sadd.s32 1, %s2278_s14 }
   0xe   : > { %s2478_s25 = scalar_select %p43_p1, %s2286_s16, %s45_s21  }
   0xf   : > { %p2483_p3 = por %p53_p2, %p52_p0  ;;  %s1873_s27 = sadd.s32 4, %s2474_s23 }
  0x10   : > { %3353 = sst [smem:[#allocation13_spill]] %s2478_s25  ;;  %s1875_s28 = sadd.s32 4, %s1873_s27 }
  0x11   : > { %p82_p4 = scmp.ne.s32.totalorder %s2278_s14, %s2274_s13  ;;  %s72_s29 = ssub.s32 %s1873_s27, %s1875_s28 }
  0x12   : > { %p112_p5 = scmp.eq.s32.totalorder %s2461_s18, 3  ;;  %p73_p6 = scmp.eq.s32.totalorder %s72_s29, 0 }
  0x13   : > { %p2491_p7 = por %p82_p4, %p53_p2  ;;  %p117_p9 = scmp.ne.s32.totalorder %s2282_s15, %s2270_s12 }
  0x14   : > { %p2498_p8 = por %p112_p5, %p52_p0  ;;  %p118_p10 = scmp.eq.s32.totalorder %s1780_s19, 3 }
  0x15   : > { %s3355_s30 = scalar_select %p2491_p7, 1, 0 }
  0x16   : > { %s3356_s4 = scalar_select %p2498_p8, 1, 0 }
  0x17   : > { %s2505_s5 = scalar_select %p73_p6, %s2278_s14, %s75_s24  }
  0x18   : > { %p1783_p11 = scmp.ge.s32.totalorder %s2290_s17, 1  ;;  %p125_p12 = scmp.lt.s32.totalorder %s2290_s17, 5 }
  0x19   : > { %3357 = sst [smem:[#allocation14_spill]] %s2505_s5  ;;  %p2509_p13 = por %p118_p10, %p117_p9 }
  0x1a   : > { %p1897_p1 = scmp.eq.s32.totalorder %s2461_s18, 0  ;;  %p2514_p2 = pnand %p1783_p11, %p125_p12 }
  0x1b   : > { %s3358_s6 = scalar_select %p2509_p13, 1, 0 }
  0x1c   : > { %s3361_s0 = sld [smem:[#allocation16_spill]]  ;;  %p1889_p0 = pneg %p2514_p2 }
  0x1d   : > { %3359 = sst [smem:[#allocation15_spill]] %s3358_s6 }
  0x1e   : > { %p1890_p4 = pnand %p1897_p1, %p1889_p0 }
  0x20   : > { %p2131_p6 = pneg %p1890_p4 }
  0x22   : > { %s138_s10 = sshll.u32 %s3361_s0, 4  ;;  %s139_s10 = int_to_ptr.vmem [resolvable:$true] %s138_s10 }
  0x23   : > { %s2129_s11 = scalar_lea.vmem %s139_s10, 16  ;;  %p2137_p13 = scmp.lt.s32.totalorder %s139_s10, %s139_s10 }
  0x24   : > { %p2130_p5 = scmp.ne.s32.totalorder %s139_s10, %s2129_s11  ;;  %p2138_p11 = scmp.lt.s32.totalorder %s2129_s11, %s2129_s11 }
  0x26   : > { %p2132_p9 = pnand %p2131_p6, %p2130_p5  ;;  %p2139_p12 = por %p2138_p11, %p2137_p13 }
  0x28   : > { %p2133_p10 = pneg %p2132_p9 }
  0x2a   : > { %p2140_p8 = pnand %p2139_p12, %p2133_p10 }
  0x2c   : > { %2143 = shalt.err (!%p2140_p8)
}
  0x2d   : > { %s2356_s19 = smov [#allocation3]   ;;  %p1785_p7 = scmp.ge.s32.totalorder %s2290_s17, 4 }
  0x2e   : > { %1892 = dma.vmem_to_smem (!%p1890_p4), %s139_s10, 16, %s2356_s19, [#allocation5]  }
  0x2f   : > { %145 = sbr.rel (%p1785_p7) target bundleno = 238 (0xee), region = 20 }
  0x36   : > { %148 = sbr.rel (!%p2483_p3) target bundleno = 229 (0xe5), region = 24  ;;  %s150_s21 = sand.u32 (%p2483_p3), 1, %s2286_s16  }
  0x37   : > { %s154_s22 = ssub.s32 (%p2483_p3), 17, %s2474_s23  ;;  %s1786_s24 = sshll.u32 (%p2483_p3), %s150_s21, 3 }
  0x38   : > { %p155_p0 = scmp.lt.s32.totalorder (%p2483_p3), %s154_s22, 4  ;;  %s3362_s1 = sld [smem:[#allocation17_spill]] (%p2483_p3) }
  0x39   : > { %s2539_s9 = scalar_lea.vmem (%p2483_p3), [#allocation6], %s1786_s24  }
  0x3d   : > { %s3389_s22 = smov (!%p155_p0, %s154_s22), 4 }
  0x3e   : > { %s2534_s29 = scalar_lea.vmem %s3362_s1, %s2474_s23   ;;  %s1788_s8 = sshll.u32 %s3389_s22, 5 }
  0x3f   : > { %p1790_p7 = scmp.eq.s32.totalorder %s1788_s8, 0 }
  0x40   : > { %p163_p3 = scmp.lt.u32.totalorder (!%p1790_p7), %s3389_s22, 8 }
  0x41   : > { %162 = sbr.rel (%p1790_p7) target bundleno = 229 (0xe5), region = 28 }
  0x48   : > { %166 = sbr.rel (%p163_p3) target bundleno = 220 (0xdc), region = 32  ;;  %s2543_s26 = sand.u32 (!%p163_p3), 7, %s3389_s22  }
  0x49   : > { %p184_p8 = scmp.eq.s32.totalorder (!%p163_p3), %s2543_s26, 0  ;;  %p1791_p13 = scmp.ne.s32.totalorder (!%p163_p3), %s2543_s26, 0 }
  0x4f   : > { %187 = sbr.rel (%p1791_p13) target bundleno = 148 (0x94), region = 47  ;;  %s3344_s10 = sshrl.u32 (!%p1791_p13), %s3389_s22, 3 }
  0x50   : > { %s2550_s11 = sshrl.u32 (!%p1791_p13), %s3344_s10, 5 }
  0x51   : > { %p1792_p4 = scmp.le.s32.totalorder (!%p1791_p13), %s2550_s11, 0 }
  0x56   : > { %1693 = sbr.rel (%p1792_p4) target bundleno = 126 (0x7e), region = 197  ;;  %s3363_s19 = smov (!%p1792_p4), %s2539_s9 }
  0x57   : > { %s3364_s21 = smov (!%p1792_p4), %s2534_s29  ;;  %s2559_s24 = smov (!%p1792_p4), 0  }
  0x58   : > { %s2561_s27 = smov (!%p1792_p4), 0  }
  0x5d LB: >> { %v201_v0 = vld [vmem:[%s2298_s21] sm:$0xff]  ;;  %v203_v1 = vld [vmem:[%s2298_s21 + $0x8] sm:$0xff]  ;;  %v205_v2 = vld [vmem:[%s2298_s21 + $0x10] sm:$0xff]  ;;  %s329_s28 = sadd.s32 1, %s2302_s24  ;;  %s195_s27 = sadd.s32 1, %s2306_s27   ;;  %s2306_s27 = sphi %s2561_s27, %s195_s27   ;;  %s2302_s24 = sphi %s2559_s24, %s3367_s24   ;;  %s2298_s21 = sphi %s3364_s21, %s3366_s21   ;;  %s2294_s19 = sphi %s3363_s19, %s3365_s19  }
  0x5e   : >> { %202 = vst [vmem:[%s2294_s19] sm:$0xff] %v201_v0  ;;  %204 = vst [vmem:[%s2294_s19 + $0x8] sm:$0xff] %v203_v1  ;;  %v207_v3 = vld [vmem:[%s2298_s21 + $0x18] sm:$0xff]  ;;  %v209_v4 = vld [vmem:[%s2298_s21 + $0x20] sm:$0xff]  ;;  %p330_p5 = scmp.ge.s32.totalorder %s329_s28, %s2550_s11  ;;  %p194_p6 = scmp.ge.s32.totalorder %s195_s27, %s2550_s11 }
  0x5f   : >> { %206 = vst [vmem:[%s2294_s19 + $0x10] sm:$0xff] %v205_v2  ;;  %v211_v5 = vld [vmem:[%s2298_s21 + $0x28] sm:$0xff]  ;;  %208 = vst [vmem:[%s2294_s19 + $0x18] sm:$0xff] %v207_v3  ;;  %v213_v6 = vld [vmem:[%s2298_s21 + $0x30] sm:$0xff] }
  0x60   : >> { %210 = vst [vmem:[%s2294_s19 + $0x20] sm:$0xff] %v209_v4  ;;  %212 = vst [vmem:[%s2294_s19 + $0x28] sm:$0xff] %v211_v5  ;;  %v215_v7 = vld [vmem:[%s2298_s21 + $0x38] sm:$0xff]  ;;  %v217_v8 = vld [vmem:[%s2298_s21 + $0x40] sm:$0xff]  ;;  %s3391_s28 = smov (%p330_p5, %s329_s28), 0 }
  0x61   : >> { %214 = vst [vmem:[%s2294_s19 + $0x30] sm:$0xff] %v213_v6  ;;  %216 = vst [vmem:[%s2294_s19 + $0x38] sm:$0xff] %v215_v7  ;;  %v219_v9 = vld [vmem:[%s2298_s21 + $0x48] sm:$0xff]  ;;  %v221_v10 = vld [vmem:[%s2298_s21 + $0x50] sm:$0xff]  ;;  %s1793_s8 = sshll.u32 %s3391_s28, 8 }
  0x62   : >> { %218 = vst [vmem:[%s2294_s19 + $0x40] sm:$0xff] %v217_v8  ;;  %v223_v11 = vld [vmem:[%s2298_s21 + $0x58] sm:$0xff]  ;;  %220 = vst [vmem:[%s2294_s19 + $0x48] sm:$0xff] %v219_v9  ;;  %v225_v12 = vld [vmem:[%s2298_s21 + $0x60] sm:$0xff]  ;;  %s2617_s24 = scalar_lea.vmem %s2534_s29, %s1793_s8   ;;  %s2620_s10 = scalar_lea.vmem %s2539_s9, %s1793_s8 [#allocation6]  }
  0x63   : >> { %222 = vst [vmem:[%s2294_s19 + $0x50] sm:$0xff] %v221_v10  ;;  %224 = vst [vmem:[%s2294_s19 + $0x58] sm:$0xff] %v223_v11  ;;  %v227_v13 = vld [vmem:[%s2298_s21 + $0x68] sm:$0xff]  ;;  %v229_v14 = vld [vmem:[%s2298_s21 + $0x70] sm:$0xff] }
  0x64   : >> { %226 = vst [vmem:[%s2294_s19 + $0x60] sm:$0xff] %v225_v12  ;;  %228 = vst [vmem:[%s2294_s19 + $0x68] sm:$0xff] %v227_v13  ;;  %v231_v15 = vld [vmem:[%s2298_s21 + $0x78] sm:$0xff]  ;;  %v233_v16 = vld [vmem:[%s2298_s21 + $0x80] sm:$0xff] }
  0x65   : >> { %230 = vst [vmem:[%s2294_s19 + $0x70] sm:$0xff] %v229_v14  ;;  %v235_v17 = vld [vmem:[%s2298_s21 + $0x88] sm:$0xff]  ;;  %232 = vst [vmem:[%s2294_s19 + $0x78] sm:$0xff] %v231_v15  ;;  %v237_v18 = vld [vmem:[%s2298_s21 + $0x90] sm:$0xff] }
  0x66   : >> { %234 = vst [vmem:[%s2294_s19 + $0x80] sm:$0xff] %v233_v16  ;;  %236 = vst [vmem:[%s2294_s19 + $0x88] sm:$0xff] %v235_v17  ;;  %v239_v19 = vld [vmem:[%s2298_s21 + $0x98] sm:$0xff]  ;;  %v241_v20 = vld [vmem:[%s2298_s21 + $0xa0] sm:$0xff] }
  0x67   : >> { %238 = vst [vmem:[%s2294_s19 + $0x90] sm:$0xff] %v237_v18  ;;  %240 = vst [vmem:[%s2294_s19 + $0x98] sm:$0xff] %v239_v19  ;;  %v243_v21 = vld [vmem:[%s2298_s21 + $0xa8] sm:$0xff]  ;;  %v245_v22 = vld [vmem:[%s2298_s21 + $0xb0] sm:$0xff] }
  0x68   : >> { %242 = vst [vmem:[%s2294_s19 + $0xa0] sm:$0xff] %v241_v20  ;;  %v247_v23 = vld [vmem:[%s2298_s21 + $0xb8] sm:$0xff]  ;;  %244 = vst [vmem:[%s2294_s19 + $0xa8] sm:$0xff] %v243_v21  ;;  %v249_v24 = vld [vmem:[%s2298_s21 + $0xc0] sm:$0xff] }
  0x69   : >> { %246 = vst [vmem:[%s2294_s19 + $0xb0] sm:$0xff] %v245_v22  ;;  %248 = vst [vmem:[%s2294_s19 + $0xb8] sm:$0xff] %v247_v23  ;;  %v251_v25 = vld [vmem:[%s2298_s21 + $0xc8] sm:$0xff]  ;;  %v253_v26 = vld [vmem:[%s2298_s21 + $0xd0] sm:$0xff] }
  0x6a   : >> { %250 = vst [vmem:[%s2294_s19 + $0xc0] sm:$0xff] %v249_v24  ;;  %252 = vst [vmem:[%s2294_s19 + $0xc8] sm:$0xff] %v251_v25  ;;  %v255_v27 = vld [vmem:[%s2298_s21 + $0xd8] sm:$0xff]  ;;  %v257_v28 = vld [vmem:[%s2298_s21 + $0xe0] sm:$0xff] }
  0x6b   : >> { %254 = vst [vmem:[%s2294_s19 + $0xd0] sm:$0xff] %v253_v26  ;;  %v259_v29 = vld [vmem:[%s2298_s21 + $0xe8] sm:$0xff]  ;;  %256 = vst [vmem:[%s2294_s19 + $0xd8] sm:$0xff] %v255_v27  ;;  %v261_v30 = vld [vmem:[%s2298_s21 + $0xf0] sm:$0xff] }
  0x6c   : >> { %258 = vst [vmem:[%s2294_s19 + $0xe0] sm:$0xff] %v257_v28  ;;  %260 = vst [vmem:[%s2294_s19 + $0xe8] sm:$0xff] %v259_v29  ;;  %v263_v31 = vld [vmem:[%s2298_s21 + $0xf8] sm:$0xff]  ;;  %v269_v34 = vld [vmem:[%s2298_s21 + $0x21] sm:$0xff] }
  0x6d   : >> { %v265_v32 = vld [vmem:[%s2298_s21 + $0x11] sm:$0xff]  ;;  %262 = vst [vmem:[%s2294_s19 + $0xf0] sm:$0xff] %v261_v30  ;;  %264 = vst [vmem:[%s2294_s19 + $0xf8] sm:$0xff] %v263_v31  ;;  %v267_v33 = vld [vmem:[%s2298_s21 + $0x19] sm:$0xff] }
  0x6e   : >> { %266 = vst [vmem:[%s2294_s19 + $0x4] sm:$0xff] %v265_v32  ;;  %v271_v35 = vld [vmem:[%s2298_s21 + $0x29] sm:$0xff]  ;;  %268 = vst [vmem:[%s2294_s19 + $0xc] sm:$0xff] %v267_v33  ;;  %v273_v36 = vld [vmem:[%s2298_s21 + $0x31] sm:$0xff] }
  0x6f   : >> { %270 = vst [vmem:[%s2294_s19 + $0x14] sm:$0xff] %v269_v34  ;;  %272 = vst [vmem:[%s2294_s19 + $0x1c] sm:$0xff] %v271_v35  ;;  %v275_v37 = vld [vmem:[%s2298_s21 + $0x39] sm:$0xff]  ;;  %v277_v38 = vld [vmem:[%s2298_s21 + $0x41] sm:$0xff] }
  0x70   : >> { %274 = vst [vmem:[%s2294_s19 + $0x24] sm:$0xff] %v273_v36  ;;  %276 = vst [vmem:[%s2294_s19 + $0x2c] sm:$0xff] %v275_v37  ;;  %v279_v39 = vld [vmem:[%s2298_s21 + $0x49] sm:$0xff]  ;;  %v281_v40 = vld [vmem:[%s2298_s21 + $0x51] sm:$0xff] }
  0x71   : >> { %278 = vst [vmem:[%s2294_s19 + $0x34] sm:$0xff] %v277_v38  ;;  %v283_v41 = vld [vmem:[%s2298_s21 + $0x59] sm:$0xff]  ;;  %280 = vst [vmem:[%s2294_s19 + $0x3c] sm:$0xff] %v279_v39  ;;  %v285_v42 = vld [vmem:[%s2298_s21 + $0x61] sm:$0xff] }
  0x72   : >> { %282 = vst [vmem:[%s2294_s19 + $0x44] sm:$0xff] %v281_v40  ;;  %284 = vst [vmem:[%s2294_s19 + $0x4c] sm:$0xff] %v283_v41  ;;  %v287_v43 = vld [vmem:[%s2298_s21 + $0x69] sm:$0xff]  ;;  %v289_v44 = vld [vmem:[%s2298_s21 + $0x71] sm:$0xff] }
  0x73   : >> { %286 = vst [vmem:[%s2294_s19 + $0x54] sm:$0xff] %v285_v42  ;;  %288 = vst [vmem:[%s2294_s19 + $0x5c] sm:$0xff] %v287_v43  ;;  %v291_v45 = vld [vmem:[%s2298_s21 + $0x79] sm:$0xff]  ;;  %v293_v46 = vld [vmem:[%s2298_s21 + $0x81] sm:$0xff] }
  0x74   : >> { %290 = vst [vmem:[%s2294_s19 + $0x64] sm:$0xff] %v289_v44  ;;  %v295_v47 = vld [vmem:[%s2298_s21 + $0x89] sm:$0xff]  ;;  %292 = vst [vmem:[%s2294_s19 + $0x6c] sm:$0xff] %v291_v45  ;;  %v297_v48 = vld [vmem:[%s2298_s21 + $0x91] sm:$0xff] }
  0x75   : >> { %294 = vst [vmem:[%s2294_s19 + $0x74] sm:$0xff] %v293_v46  ;;  %296 = vst [vmem:[%s2294_s19 + $0x7c] sm:$0xff] %v295_v47  ;;  %v299_v49 = vld [vmem:[%s2298_s21 + $0x99] sm:$0xff]  ;;  %v301_v50 = vld [vmem:[%s2298_s21 + $0xa1] sm:$0xff] }
  0x76   : >> { %298 = vst [vmem:[%s2294_s19 + $0x84] sm:$0xff] %v297_v48  ;;  %300 = vst [vmem:[%s2294_s19 + $0x8c] sm:$0xff] %v299_v49  ;;  %v303_v51 = vld [vmem:[%s2298_s21 + $0xa9] sm:$0xff]  ;;  %v305_v52 = vld [vmem:[%s2298_s21 + $0xb1] sm:$0xff] }
  0x77   : >> { %302 = vst [vmem:[%s2294_s19 + $0x94] sm:$0xff] %v301_v50  ;;  %v307_v53 = vld [vmem:[%s2298_s21 + $0xb9] sm:$0xff]  ;;  %304 = vst [vmem:[%s2294_s19 + $0x9c] sm:$0xff] %v303_v51  ;;  %v309_v54 = vld [vmem:[%s2298_s21 + $0xc1] sm:$0xff]  ;;  %197 = sbr.rel (!%p194_p6) target bundleno = 93 (0x5d), region = 203 }
  0x78   : >> { %306 = vst [vmem:[%s2294_s19 + $0xa4] sm:$0xff] %v305_v52  ;;  %308 = vst [vmem:[%s2294_s19 + $0xac] sm:$0xff] %v307_v53  ;;  %v311_v55 = vld [vmem:[%s2298_s21 + $0xc9] sm:$0xff]  ;;  %v313_v56 = vld [vmem:[%s2298_s21 + $0xd1] sm:$0xff] }
  0x79   : >> { %310 = vst [vmem:[%s2294_s19 + $0xb4] sm:$0xff] %v309_v54  ;;  %312 = vst [vmem:[%s2294_s19 + $0xbc] sm:$0xff] %v311_v55  ;;  %v315_v57 = vld [vmem:[%s2298_s21 + $0xd9] sm:$0xff]  ;;  %v317_v58 = vld [vmem:[%s2298_s21 + $0xe1] sm:$0xff] }
  0x7a   : >> { %314 = vst [vmem:[%s2294_s19 + $0xc4] sm:$0xff] %v313_v56  ;;  %v319_v59 = vld [vmem:[%s2298_s21 + $0xe9] sm:$0xff]  ;;  %316 = vst [vmem:[%s2294_s19 + $0xcc] sm:$0xff] %v315_v57  ;;  %v321_v60 = vld [vmem:[%s2298_s21 + $0xf1] sm:$0xff] }
  0x7b   : >> { %318 = vst [vmem:[%s2294_s19 + $0xd4] sm:$0xff] %v317_v58  ;;  %320 = vst [vmem:[%s2294_s19 + $0xdc] sm:$0xff] %v319_v59  ;;  %v323_v61 = vld [vmem:[%s2298_s21 + $0xf9] sm:$0xff]  ;;  %v325_v62 = vld [vmem:[%s2298_s21 + $0x101] sm:$0xff] }
  0x7c   : >> { %322 = vst [vmem:[%s2294_s19 + $0xe4] sm:$0xff] %v321_v60  ;;  %324 = vst [vmem:[%s2294_s19 + $0xec] sm:$0xff] %v323_v61  ;;  %v327_v63 = vld [vmem:[%s2298_s21 + $0x109] sm:$0xff]  ;;  %s3366_s21 = smov %s2617_s24  ;;  %s3367_s24 = smov %s3391_s28 }
  0x7d   : >> { %326 = vst [vmem:[%s2294_s19 + $0xf4] sm:$0xff] %v325_v62  ;;  %328 = vst [vmem:[%s2294_s19 + $0xfc] sm:$0xff] %v327_v63  ;;  %s3365_s19 = smov %s2620_s10 }
  0x7e PF: > { %s3368_s8 = sshrl.u32 %s3389_s22, 3  ;;  %s1876_s1 = sshll.u32 %s2550_s11, 12 }
  0x7f   : > { %s2726_s0 = sand.u32 31, %s3368_s8   ;;  %s340_s25 = sshra.s32 %s1876_s1, 4 }
  0x80   : > { %s2730_s16 = scalar_lea.vmem %s2534_s29, %s340_s25   ;;  %s344_s10 = scalar_lea.vmem %s2539_s9, %s340_s25 [#allocation6]  }
  0x81   : > { %p1798_p9 = scmp.le.s32.totalorder %s2726_s0, 0 }
  0x82   : > { %s2308_s28 = smov (!%p1798_p9), %s344_s10   ;;  %s2312_s27 = smov (!%p1798_p9), %s2730_s16  }
  0x83   : > { %1707 = sbr.rel (%p1798_p9) target bundleno = 148 (0x94), region = 208  ;;  %s2316_s5 = smov (!%p1798_p9), 0  }
  0x84   : > { %s2320_s19 = smov (!%p1798_p9), 0  }
  0x8a LB: >> { %v356_v0 = vld [vmem:[%s2314_s27] sm:$0xff]  ;;  %v358_v1 = vld [vmem:[%s2314_s27 + $0x11] sm:$0xff]  ;;  %s360_s1 = sadd.s32 1, %s2318_s5  ;;  %s350_s19 = sadd.s32 1, %s2322_s19   ;;  %s2322_s19 = sphi %s2320_s19, %s350_s19   ;;  %s2318_s5 = sphi %s2316_s5, %s2317_s5   ;;  %s2314_s27 = sphi %s2312_s27, %s365_s27   ;;  %s2310_s28 = sphi %s2308_s28, %s366_s28  }
  0x8b   : >> { %357 = vst [vmem:[%s2310_s28] sm:$0xff] %v356_v0  ;;  %p361_p10 = scmp.ge.s32.totalorder %s360_s1, %s2726_s0  ;;  %p349_p11 = scmp.ge.s32.totalorder %s350_s19, %s2726_s0 }
  0x8c   : >> { %359 = vst [vmem:[%s2310_s28 + $0x4] sm:$0xff] %v358_v1 }
  0x8d   : >> { %s3393_s1 = smov (%p361_p10, %s360_s1), 0  ;;  %352 = sbr.rel (!%p349_p11) target bundleno = 138 (0x8a), region = 214 }
  0x8e   : >> { %s1799_s25 = sshll.u32 %s3393_s1, 3  ;;  %s2317_s5 = smov %s3393_s1  }
  0x8f   : >> { %s365_s27 = scalar_lea.vmem %s2730_s16, %s1799_s25   ;;  %s366_s28 = scalar_lea.vmem %s344_s10, %s1799_s25 [#allocation6]  }
  0x94 PF: > { %369 = sbr.rel (%p184_p8) target bundleno = 220 (0xdc), region = 65  ;;  %s371_s5 = ssub.s32 (!%p184_p8), %s3389_s22, %s2543_s26 }
  0x95   : > { %s375_s11 = sshrl.u32 (!%p184_p8), %s3389_s22, 3  ;;  %s2744_s21 = scalar_lea.vmem (!%p184_p8), %s2534_s29, %s371_s5 }
  0x96   : > { %s2747_s24 = scalar_lea.vmem (!%p184_p8), %s2539_s9, %s371_s5 [#allocation6]  ;;  %s2751_s8 = sshrl.u32 (!%p184_p8), %s375_s11, 5 }
  0x97   : > { %p1801_p12 = scmp.le.s32.totalorder (!%p184_p8), %s2751_s8, 0 }
  0x9b   : > { %1721 = sbr.rel (%p1801_p12) target bundleno = 195 (0xc3), region = 219  ;;  %s3369_s0 = smov (!%p1801_p12), %s2539_s9 }
  0x9c   : > { %s3370_s16 = smov (!%p1801_p12), %s2534_s29  ;;  %s2760_s10 = smov (!%p1801_p12), 0  }
  0x9d   : > { %s2762_s28 = smov (!%p1801_p12), 0  }
  0xa2 LB: >> { %v388_v2 = vld [vmem:[%s2330_s16] sm:$0xff]  ;;  %v390_v3 = vld [vmem:[%s2330_s16 + $0x8] sm:$0xff]  ;;  %v392_v4 = vld [vmem:[%s2330_s16 + $0x10] sm:$0xff]  ;;  %s516_s27 = sadd.s32 1, %s2334_s10  ;;  %s382_s28 = sadd.s32 1, %s2338_s28   ;;  %s2338_s28 = sphi %s2762_s28, %s382_s28   ;;  %s2334_s10 = sphi %s2760_s10, %s3373_s10   ;;  %s2330_s16 = sphi %s3370_s16, %s3372_s16   ;;  %s2326_s0 = sphi %s3369_s0, %s3371_s0  }
  0xa3   : >> { %389 = vst [vmem:[%s2326_s0] sm:$0xff] %v388_v2  ;;  %391 = vst [vmem:[%s2326_s0 + $0x8] sm:$0xff] %v390_v3  ;;  %v394_v5 = vld [vmem:[%s2330_s16 + $0x18] sm:$0xff]  ;;  %v396_v6 = vld [vmem:[%s2330_s16 + $0x20] sm:$0xff]  ;;  %p517_p0 = scmp.ge.s32.totalorder %s516_s27, %s2751_s8  ;;  %p381_p7 = scmp.ge.s32.totalorder %s382_s28, %s2751_s8 }
  0xa4   : >> { %393 = vst [vmem:[%s2326_s0 + $0x10] sm:$0xff] %v392_v4  ;;  %v398_v7 = vld [vmem:[%s2330_s16 + $0x28] sm:$0xff]  ;;  %395 = vst [vmem:[%s2326_s0 + $0x18] sm:$0xff] %v394_v5  ;;  %v400_v8 = vld [vmem:[%s2330_s16 + $0x30] sm:$0xff] }
  0xa5   : >> { %397 = vst [vmem:[%s2326_s0 + $0x20] sm:$0xff] %v396_v6  ;;  %399 = vst [vmem:[%s2326_s0 + $0x28] sm:$0xff] %v398_v7  ;;  %v402_v9 = vld [vmem:[%s2330_s16 + $0x38] sm:$0xff]  ;;  %v404_v10 = vld [vmem:[%s2330_s16 + $0x40] sm:$0xff]  ;;  %s3395_s27 = smov (%p517_p0, %s516_s27), 0 }
  0xa6   : >> { %401 = vst [vmem:[%s2326_s0 + $0x30] sm:$0xff] %v400_v8  ;;  %403 = vst [vmem:[%s2326_s0 + $0x38] sm:$0xff] %v402_v9  ;;  %v406_v11 = vld [vmem:[%s2330_s16 + $0x48] sm:$0xff]  ;;  %v408_v12 = vld [vmem:[%s2330_s16 + $0x50] sm:$0xff]  ;;  %s1802_s19 = sshll.u32 %s3395_s27, 8  ;;  %s3373_s10 = smov %s3395_s27 }
  0xa7   : >> { %405 = vst [vmem:[%s2326_s0 + $0x40] sm:$0xff] %v404_v10  ;;  %v410_v13 = vld [vmem:[%s2330_s16 + $0x58] sm:$0xff]  ;;  %407 = vst [vmem:[%s2326_s0 + $0x48] sm:$0xff] %v406_v11  ;;  %v412_v14 = vld [vmem:[%s2330_s16 + $0x60] sm:$0xff]  ;;  %s2818_s1 = scalar_lea.vmem %s2534_s29, %s1802_s19   ;;  %s2821_s25 = scalar_lea.vmem %s2539_s9, %s1802_s19 [#allocation6]  }
  0xa8   : >> { %409 = vst [vmem:[%s2326_s0 + $0x50] sm:$0xff] %v408_v12  ;;  %411 = vst [vmem:[%s2326_s0 + $0x58] sm:$0xff] %v410_v13  ;;  %v414_v15 = vld [vmem:[%s2330_s16 + $0x68] sm:$0xff]  ;;  %v416_v16 = vld [vmem:[%s2330_s16 + $0x70] sm:$0xff] }
  0xa9   : >> { %413 = vst [vmem:[%s2326_s0 + $0x60] sm:$0xff] %v412_v14  ;;  %415 = vst [vmem:[%s2326_s0 + $0x68] sm:$0xff] %v414_v15  ;;  %v418_v17 = vld [vmem:[%s2330_s16 + $0x78] sm:$0xff]  ;;  %v420_v18 = vld [vmem:[%s2330_s16 + $0x80] sm:$0xff] }
  0xaa   : >> { %417 = vst [vmem:[%s2326_s0 + $0x70] sm:$0xff] %v416_v16  ;;  %v422_v19 = vld [vmem:[%s2330_s16 + $0x88] sm:$0xff]  ;;  %419 = vst [vmem:[%s2326_s0 + $0x78] sm:$0xff] %v418_v17  ;;  %v424_v20 = vld [vmem:[%s2330_s16 + $0x90] sm:$0xff] }
  0xab   : >> { %421 = vst [vmem:[%s2326_s0 + $0x80] sm:$0xff] %v420_v18  ;;  %423 = vst [vmem:[%s2326_s0 + $0x88] sm:$0xff] %v422_v19  ;;  %v426_v21 = vld [vmem:[%s2330_s16 + $0x98] sm:$0xff]  ;;  %v428_v22 = vld [vmem:[%s2330_s16 + $0xa0] sm:$0xff] }
  0xac   : >> { %425 = vst [vmem:[%s2326_s0 + $0x90] sm:$0xff] %v424_v20  ;;  %427 = vst [vmem:[%s2326_s0 + $0x98] sm:$0xff] %v426_v21  ;;  %v430_v23 = vld [vmem:[%s2330_s16 + $0xa8] sm:$0xff]  ;;  %v432_v24 = vld [vmem:[%s2330_s16 + $0xb0] sm:$0xff] }
  0xad   : >> { %429 = vst [vmem:[%s2326_s0 + $0xa0] sm:$0xff] %v428_v22  ;;  %v434_v25 = vld [vmem:[%s2330_s16 + $0xb8] sm:$0xff]  ;;  %431 = vst [vmem:[%s2326_s0 + $0xa8] sm:$0xff] %v430_v23  ;;  %v436_v26 = vld [vmem:[%s2330_s16 + $0xc0] sm:$0xff] }
  0xae   : >> { %433 = vst [vmem:[%s2326_s0 + $0xb0] sm:$0xff] %v432_v24  ;;  %435 = vst [vmem:[%s2326_s0 + $0xb8] sm:$0xff] %v434_v25  ;;  %v438_v27 = vld [vmem:[%s2330_s16 + $0xc8] sm:$0xff]  ;;  %v440_v28 = vld [vmem:[%s2330_s16 + $0xd0] sm:$0xff] }
  0xaf   : >> { %437 = vst [vmem:[%s2326_s0 + $0xc0] sm:$0xff] %v436_v26  ;;  %439 = vst [vmem:[%s2326_s0 + $0xc8] sm:$0xff] %v438_v27  ;;  %v442_v29 = vld [vmem:[%s2330_s16 + $0xd8] sm:$0xff]  ;;  %v444_v30 = vld [vmem:[%s2330_s16 + $0xe0] sm:$0xff] }
  0xb0   : >> { %441 = vst [vmem:[%s2326_s0 + $0xd0] sm:$0xff] %v440_v28  ;;  %v446_v31 = vld [vmem:[%s2330_s16 + $0xe8] sm:$0xff]  ;;  %443 = vst [vmem:[%s2326_s0 + $0xd8] sm:$0xff] %v442_v29  ;;  %v448_v32 = vld [vmem:[%s2330_s16 + $0xf0] sm:$0xff] }
  0xb1   : >> { %445 = vst [vmem:[%s2326_s0 + $0xe0] sm:$0xff] %v444_v30  ;;  %447 = vst [vmem:[%s2326_s0 + $0xe8] sm:$0xff] %v446_v31  ;;  %v450_v33 = vld [vmem:[%s2330_s16 + $0xf8] sm:$0xff]  ;;  %v456_v36 = vld [vmem:[%s2330_s16 + $0x21] sm:$0xff] }
  0xb2   : >> { %v452_v34 = vld [vmem:[%s2330_s16 + $0x11] sm:$0xff]  ;;  %449 = vst [vmem:[%s2326_s0 + $0xf0] sm:$0xff] %v448_v32  ;;  %451 = vst [vmem:[%s2326_s0 + $0xf8] sm:$0xff] %v450_v33  ;;  %v454_v35 = vld [vmem:[%s2330_s16 + $0x19] sm:$0xff] }
  0xb3   : >> { %453 = vst [vmem:[%s2326_s0 + $0x4] sm:$0xff] %v452_v34  ;;  %v458_v37 = vld [vmem:[%s2330_s16 + $0x29] sm:$0xff]  ;;  %455 = vst [vmem:[%s2326_s0 + $0xc] sm:$0xff] %v454_v35  ;;  %v460_v38 = vld [vmem:[%s2330_s16 + $0x31] sm:$0xff] }
  0xb4   : >> { %457 = vst [vmem:[%s2326_s0 + $0x14] sm:$0xff] %v456_v36  ;;  %459 = vst [vmem:[%s2326_s0 + $0x1c] sm:$0xff] %v458_v37  ;;  %v462_v39 = vld [vmem:[%s2330_s16 + $0x39] sm:$0xff]  ;;  %v464_v40 = vld [vmem:[%s2330_s16 + $0x41] sm:$0xff] }
  0xb5   : >> { %461 = vst [vmem:[%s2326_s0 + $0x24] sm:$0xff] %v460_v38  ;;  %463 = vst [vmem:[%s2326_s0 + $0x2c] sm:$0xff] %v462_v39  ;;  %v466_v41 = vld [vmem:[%s2330_s16 + $0x49] sm:$0xff]  ;;  %v468_v42 = vld [vmem:[%s2330_s16 + $0x51] sm:$0xff] }
  0xb6   : >> { %465 = vst [vmem:[%s2326_s0 + $0x34] sm:$0xff] %v464_v40  ;;  %v470_v43 = vld [vmem:[%s2330_s16 + $0x59] sm:$0xff]  ;;  %467 = vst [vmem:[%s2326_s0 + $0x3c] sm:$0xff] %v466_v41  ;;  %v472_v44 = vld [vmem:[%s2330_s16 + $0x61] sm:$0xff] }
  0xb7   : >> { %469 = vst [vmem:[%s2326_s0 + $0x44] sm:$0xff] %v468_v42  ;;  %471 = vst [vmem:[%s2326_s0 + $0x4c] sm:$0xff] %v470_v43  ;;  %v474_v45 = vld [vmem:[%s2330_s16 + $0x69] sm:$0xff]  ;;  %v476_v46 = vld [vmem:[%s2330_s16 + $0x71] sm:$0xff] }
  0xb8   : >> { %473 = vst [vmem:[%s2326_s0 + $0x54] sm:$0xff] %v472_v44  ;;  %475 = vst [vmem:[%s2326_s0 + $0x5c] sm:$0xff] %v474_v45  ;;  %v478_v47 = vld [vmem:[%s2330_s16 + $0x79] sm:$0xff]  ;;  %v480_v48 = vld [vmem:[%s2330_s16 + $0x81] sm:$0xff] }
  0xb9   : >> { %477 = vst [vmem:[%s2326_s0 + $0x64] sm:$0xff] %v476_v46  ;;  %v482_v49 = vld [vmem:[%s2330_s16 + $0x89] sm:$0xff]  ;;  %479 = vst [vmem:[%s2326_s0 + $0x6c] sm:$0xff] %v478_v47  ;;  %v484_v50 = vld [vmem:[%s2330_s16 + $0x91] sm:$0xff] }
  0xba   : >> { %481 = vst [vmem:[%s2326_s0 + $0x74] sm:$0xff] %v480_v48  ;;  %483 = vst [vmem:[%s2326_s0 + $0x7c] sm:$0xff] %v482_v49  ;;  %v486_v51 = vld [vmem:[%s2330_s16 + $0x99] sm:$0xff]  ;;  %v488_v52 = vld [vmem:[%s2330_s16 + $0xa1] sm:$0xff] }
  0xbb   : >> { %485 = vst [vmem:[%s2326_s0 + $0x84] sm:$0xff] %v484_v50  ;;  %487 = vst [vmem:[%s2326_s0 + $0x8c] sm:$0xff] %v486_v51  ;;  %v490_v53 = vld [vmem:[%s2330_s16 + $0xa9] sm:$0xff]  ;;  %v492_v54 = vld [vmem:[%s2330_s16 + $0xb1] sm:$0xff] }
  0xbc   : >> { %489 = vst [vmem:[%s2326_s0 + $0x94] sm:$0xff] %v488_v52  ;;  %v494_v55 = vld [vmem:[%s2330_s16 + $0xb9] sm:$0xff]  ;;  %491 = vst [vmem:[%s2326_s0 + $0x9c] sm:$0xff] %v490_v53  ;;  %v496_v56 = vld [vmem:[%s2330_s16 + $0xc1] sm:$0xff]  ;;  %384 = sbr.rel (!%p381_p7) target bundleno = 162 (0xa2), region = 225 }
  0xbd   : >> { %493 = vst [vmem:[%s2326_s0 + $0xa4] sm:$0xff] %v492_v54  ;;  %495 = vst [vmem:[%s2326_s0 + $0xac] sm:$0xff] %v494_v55  ;;  %v498_v57 = vld [vmem:[%s2330_s16 + $0xc9] sm:$0xff]  ;;  %v500_v58 = vld [vmem:[%s2330_s16 + $0xd1] sm:$0xff] }
  0xbe   : >> { %497 = vst [vmem:[%s2326_s0 + $0xb4] sm:$0xff] %v496_v56  ;;  %499 = vst [vmem:[%s2326_s0 + $0xbc] sm:$0xff] %v498_v57  ;;  %v502_v59 = vld [vmem:[%s2330_s16 + $0xd9] sm:$0xff]  ;;  %v504_v60 = vld [vmem:[%s2330_s16 + $0xe1] sm:$0xff] }
  0xbf   : >> { %501 = vst [vmem:[%s2326_s0 + $0xc4] sm:$0xff] %v500_v58  ;;  %v506_v61 = vld [vmem:[%s2330_s16 + $0xe9] sm:$0xff]  ;;  %503 = vst [vmem:[%s2326_s0 + $0xcc] sm:$0xff] %v502_v59  ;;  %v508_v62 = vld [vmem:[%s2330_s16 + $0xf1] sm:$0xff] }
  0xc0   : >> { %505 = vst [vmem:[%s2326_s0 + $0xd4] sm:$0xff] %v504_v60  ;;  %507 = vst [vmem:[%s2326_s0 + $0xdc] sm:$0xff] %v506_v61  ;;  %v510_v63 = vld [vmem:[%s2330_s16 + $0xf9] sm:$0xff]  ;;  %v512_v0 = vld [vmem:[%s2330_s16 + $0x101] sm:$0xff] }
  0xc1   : >> { %509 = vst [vmem:[%s2326_s0 + $0xe4] sm:$0xff] %v508_v62  ;;  %511 = vst [vmem:[%s2326_s0 + $0xec] sm:$0xff] %v510_v63  ;;  %v514_v1 = vld [vmem:[%s2330_s16 + $0x109] sm:$0xff]  ;;  %s3372_s16 = smov %s2818_s1 }
  0xc2   : >> { %513 = vst [vmem:[%s2326_s0 + $0xf4] sm:$0xff] %v512_v0  ;;  %515 = vst [vmem:[%s2326_s0 + $0xfc] sm:$0xff] %v514_v1  ;;  %s3371_s0 = smov %s2821_s25 }
  0xc3 PF: > { %s2927_s5 = sand.u32 31, %s375_s11   ;;  %s1878_s19 = sshll.u32 %s2751_s8, 12 }
  0xc4   : > { %s527_s20 = sshra.s32 %s1878_s19, 4  ;;  %p1807_p3 = scmp.le.s32.totalorder %s2927_s5, 0 }
  0xc5   : > { %s2931_s6 = scalar_lea.vmem %s2534_s29, %s527_s20   ;;  %s531_s25 = scalar_lea.vmem %s2539_s9, %s527_s20 [#allocation6]  }
  0xc6   : > { %1735 = sbr.rel (%p1807_p3) target bundleno = 215 (0xd7), region = 230  ;;  %s2340_s27 = smov (!%p1807_p3), %s531_s25  }
  0xc7   : > { %s2344_s28 = smov (!%p1807_p3), %s2931_s6   ;;  %s2348_s1 = smov (!%p1807_p3), 0  }
  0xc8   : > { %s2352_s0 = smov (!%p1807_p3), 0  }
  0xcd LB: >> { %v543_v2 = vld [vmem:[%s2346_s28] sm:$0xff]  ;;  %v545_v3 = vld [vmem:[%s2346_s28 + $0x11] sm:$0xff]  ;;  %s547_s11 = sadd.s32 1, %s2350_s1  ;;  %s537_s0 = sadd.s32 1, %s2354_s0   ;;  %s2354_s0 = sphi %s2352_s0, %s537_s0   ;;  %s2350_s1 = sphi %s2348_s1, %s2349_s1   ;;  %s2346_s28 = sphi %s2344_s28, %s552_s28   ;;  %s2342_s27 = sphi %s2340_s27, %s553_s27  }
  0xce   : >> { %544 = vst [vmem:[%s2342_s27] sm:$0xff] %v543_v2  ;;  %p548_p8 = scmp.ge.s32.totalorder %s547_s11, %s2927_s5  ;;  %p536_p13 = scmp.ge.s32.totalorder %s537_s0, %s2927_s5 }
  0xcf   : >> { %546 = vst [vmem:[%s2342_s27 + $0x4] sm:$0xff] %v545_v3 }
  0xd0   : >> { %s3397_s11 = smov (%p548_p8, %s547_s11), 0  ;;  %539 = sbr.rel (!%p536_p13) target bundleno = 205 (0xcd), region = 236 }
  0xd1   : >> { %s1808_s20 = sshll.u32 %s3397_s11, 3  ;;  %s2349_s1 = smov %s3397_s11  }
  0xd2   : >> { %s552_s28 = scalar_lea.vmem %s2931_s6, %s1808_s20   ;;  %s553_s27 = scalar_lea.vmem %s531_s25, %s1808_s20 [#allocation6]  }
  0xd7 PF: > { %s2357_s8 = smov 0  }
  0xd8   : > { %s554_s16 = sshllo.u32 %s2357_s8, %s2543_s26 }
  0xd9   : > { %v563_v4 = vld [vmem:[%s2744_s21] sm:%s554_s16]  ;;  %v565_v5 = vld [vmem:[%s2744_s21 + $0x11] sm:%s554_s16] }
  0xda   : > { %564 = vst [vmem:[%s2747_s24] sm:%s554_s16] %v563_v4 }
  0xdb   : > { %566 = vst [vmem:[%s2747_s24 + $0x4] sm:%s554_s16] %v565_v5 }
  0xdc PF: > { %p1810_p4 = scmp.ge.u32.totalorder %s3389_s22, 8 }
  0xdd   : > { %s2358_s10 = smov (!%p1810_p4), 0  }
  0xde   : > { %169 = sbr.rel (%p1810_p4) target bundleno = 229 (0xe5), region = 36  ;;  %s170_s6 = sshllo.u32 (!%p1810_p4), %s2358_s10, %s3389_s22 }
  0xdf   : > { %v179_v6 = vld [vmem:[%s2534_s29] sm:%s170_s6] (!%p1810_p4)  ;;  %v181_v7 = vld [vmem:[%s2534_s29 + $0x11] sm:%s170_s6] (!%p1810_p4) }
  0xe0   : > { %180 = vst [vmem:[%s2539_s9] sm:%s170_s6] (!%p1810_p4), %v179_v6 }
  0xe1   : > { %182 = vst [vmem:[%s2539_s9 + $0x4] sm:%s170_s6] (!%p1810_p4), %v181_v7 }
  0xe5 PF: > { %p3374_p5 = scmp.ne.s32.totalorder %s3355_s30, 0 }
  0xe6   : > { %s572_s26 = sand.u32 (%p3374_p5), 1, %s2278_s14   ;;  %s1655_s5 = scalar_lea.vmem (%p3374_p5), %s3341_s2, %s2474_s23 }
  0xe7   : > { %570 = sbr.rel (!%p3374_p5) target bundleno = 238 (0xee), region = 90  ;;  %s1811_s19 = sshll.u32 (%p3374_p5), %s572_s26, 1  ;;  %v1813_v8 = vld [vmem:[%s1655_s5 + $0x4] sm:$0x1] (%p3374_p5)  ;;  %v1814_v9 = vld [vmem:[%s1655_s5 + $0x15] sm:$0x1] (%p3374_p5) }
  0xe8   : > { %s574_s22 = scalar_lea.vmem (%p3374_p5), [#allocation7], %s1811_s19 }
  0xe9   : > { %594 = vst [vmem:[%s574_s22] sm:$0x1] (%p3374_p5), %v1813_v8  ;;  %596 = vst [vmem:[%s574_s22 + $0x1] sm:$0x1] (%p3374_p5), %v1814_v9 }
  0xee PF: > { %618 = sbr.rel (%p2514_p2) target bundleno = 584 (0x248), region = 124 }
  0xf5   : > { %2261 = dma.done.wait (%p1897_p1), [#allocation5], 16  }
  0xf6   : > { %2263 = vsyncadd (%p1897_p1), [#allocation5], 4294967280  ;;  %s625_s23 = sand.u32 1, %s2282_s15   ;;  %s632_s30 = sand.u32 1, %s2274_s13  }
  0xf7   : > { %s2967_s29 = sshll.u32 %s625_s23, 3  ;;  %s1818_s9 = sshll.u32 %s632_s30, 1 }
  0xf8   : > { %s627_s25 = scalar_lea.vmem [#allocation6], %s2967_s29  ;;  %s634_s27 = scalar_lea.vmem [#allocation7], %s1818_s9 }
  0xf9   : > { %638 = sfence }
  0xfa   : > { %v668_v10 = vld [vmem:[%s627_s25] sm:$0xf]  ;;  %v669_v11 = vld [vmem:[%s627_s25 + $0x4] sm:$0xf]  ;;  %v670_v12 = vlaneseq  ;;  %v676_v13 = vld [vmem:[%s634_s27] sm:$0x1] }
  0xfb   : > { %v677_v14 = vld [vmem:[%s634_s27 + $0x1] sm:$0x1]  ;;  %s1821_s7 = sld [smem:[#allocation3 + $0x2]]  ;;  %s1820_s13 = sld [smem:[#allocation3 + $0x1]]  ;;  %vm702_vm2 = vcmask 1039360   ;;  %vm721_vm3 = vcmask 1031168  }
  0xfc   : > { %vm2970_vm0 = vcmp.lt.s32.totalorder %v670_v12, 512  ;;  %vm678_vm1 = vcmp.lt.s32.totalorder %v670_v12, 128  ;;  %s1822_s28 = sld [smem:[#allocation3 + $0x3]]  ;;  %s1823_s1 = sld [smem:[#allocation3 + $0x4]]  ;;  %vm740_vm4 = vcmask 1022976   ;;  %vm759_vm5 = vcmask 1014784  }
  0xfd   : > { %674 = vst.msk [vmem:[#allocation2] sm:$0xf] %vm2970_vm0, %v668_v10  ;;  %675 = vst.msk [vmem:[#allocation2 + $0x5] sm:$0xf] %vm2970_vm0, %v669_v11  ;;  %s2359_s0 = smov 126   ;;  %s2360_s11 = smov 127  }
  0xfe   : > { %680 = vst.msk [vmem:[#allocation2 + $0x4] sm:$0x1] %vm678_vm1, %v676_v13  ;;  %681 = vst.msk [vmem:[#allocation2 + $0x9] sm:$0x1] %vm678_vm1, %v677_v14  ;;  %s1824_s20 = sld [smem:[#allocation3 + $0x5]]  ;;  %s1825_s8 = sld [smem:[#allocation3 + $0x6]] }
  0xff   : > { %s2361_s16 = smov 125   ;;  %s1826_s10 = sld [smem:[#allocation3 + $0x7]]  ;;  %vm778_vm6 = vcmask 1006592   ;;  %vm797_vm7 = vcmask 998400   ;;  %vm816_vm8 = vcmask 990208   ;;  %vm835_vm9 = vcmask 982016  }
 0x100   : > { %s2362_s6 = smov 124   ;;  %s1827_s26 = sld [smem:[#allocation3 + $0x8]]  ;;  %vm854_vm10 = vcmask 973824   ;;  %vm873_vm11 = vcmask 965632   ;;  %vm892_vm12 = vcmask 957440   ;;  %vm911_vm13 = vcmask 949248  }
 0x101   : > { %v710_v16 = vstv %s1821_s7  ;;  %v691_v17 = vstv %s1820_s13  ;;  %s2363_s21 = smov 123   ;;  %s1828_s24 = sld [smem:[#allocation3 + $0x9]]  ;;  %vm930_vm14 = vcmask 941056   ;;  %vm949_vm15 = vcmask 932864  }
 0x102   : > { %v729_v24 = vstv %s1822_s28  ;;  %v748_v27 = vstv %s1823_s1  ;;  %s2364_s5 = smov 122   ;;  %s1829_s19 = sld [smem:[#allocation3 + $0xa]]  ;;  %vm968_vm1 = vcmask 924672  }
 0x103   : > { %s2365_s22 = smov 121   ;;  %s1830_s30 = sld [smem:[#allocation3 + $0xb]] }
 0x104   : > { %v767_v30 = vstv %s1824_s20  ;;  %v786_v33 = vstv %s1825_s8  ;;  %s2366_s9 = smov 120   ;;  %s1831_s25 = sld [smem:[#allocation3 + $0xc]] }
 0x105   : > { %v2978_v18 = vld [vmem:[#allocation2] sm:$0x1f]  ;;  %v2980_v19 = vld [vmem:[#allocation2 + $0x5] sm:$0x1f]  ;;  %v805_v36 = vstv %s1826_s10  ;;  %s2367_s27 = smov 119   ;;  %s1832_s7 = sld [smem:[#allocation3 + $0xd]] }
 0x106   : > { %v711_v20 = vmul.f32 %v710_v16, %v2978_v18  ;;  %v692_v21 = vmul.f32 %v691_v17, %v2978_v18  ;;  %v712_v22 = vmul.f32 %v710_v16, %v2980_v19  ;;  %v693_v23 = vmul.f32 %v691_v17, %v2980_v19  ;;  %s2368_s13 = smov 118   ;;  %s1833_s28 = sld [smem:[#allocation3 + $0xe]] }
 0x107   : > { %v731_v25 = vmul.f32 %v729_v24, %v2980_v19  ;;  %v730_v26 = vmul.f32 %v729_v24, %v2978_v18  ;;  %v750_v28 = vmul.f32 %v748_v27, %v2980_v19  ;;  %v749_v29 = vmul.f32 %v748_v27, %v2978_v18  ;;  %s2369_s1 = smov 117   ;;  %s1835_s20 = sld [smem:[#allocation3 + $0x10]] }
 0x108   : > { %715 = vrot.lane.b32.xlu1 %v711_v20, %s2359_s0  ;;  %696 = vrot.lane.b32.xlu0 %v692_v21, %s2360_s11  ;;  %v769_v31 = vmul.f32 %v767_v30, %v2980_v19  ;;  %v768_v32 = vmul.f32 %v767_v30, %v2978_v18  ;;  %v788_v34 = vmul.f32 %v786_v33, %v2980_v19  ;;  %v824_v39 = vstv %s1827_s26  ;;  %s2371_s8 = smov 115   ;;  %s2372_s10 = smov 114  }
 0x109   : > { %v787_v35 = vmul.f32 %v786_v33, %v2978_v18  ;;  %v807_v37 = vmul.f32 %v805_v36, %v2980_v19  ;;  %v806_v38 = vmul.f32 %v805_v36, %v2978_v18  ;;  %v826_v40 = vmul.f32 %v824_v39, %v2980_v19  ;;  %s2373_s26 = smov 113   ;;  %p3377_p2 = scmp.ne.s32.totalorder %s3356_s4, 0 }
 0x10a   : > { %v825_v41 = vmul.f32 %v824_v39, %v2978_v18  ;;  %v843_v42 = vstv %s1828_s24  ;;  %v862_v45 = vstv %s1829_s19  ;;  %v881_v48 = vstv %s1830_s30  ;;  %s2374_s24 = smov 112   ;;  %s2375_s19 = smov 111  }
 0x10b   : > { %v845_v43 = vmul.f32 %v843_v42, %v2980_v19  ;;  %v844_v44 = vmul.f32 %v843_v42, %v2978_v18  ;;  %v864_v46 = vmul.f32 %v862_v45, %v2980_v19  ;;  %v863_v47 = vmul.f32 %v862_v45, %v2978_v18  ;;  %s2376_s30 = smov 110  }
 0x10c   : > { %717 = vrot.lane.b32.xlu1 %v712_v22, %s2359_s0  ;;  %698 = vrot.lane.b32.xlu0 %v693_v23, %s2360_s11  ;;  %v883_v49 = vmul.f32 %v881_v48, %v2980_v19  ;;  %v882_v50 = vmul.f32 %v881_v48, %v2978_v18  ;;  %v900_v51 = vstv %s1831_s25  ;;  %v919_v54 = vstv %s1832_s7  ;;  %s1834_s0 = sld [smem:[#allocation3 + $0xf]]  ;;  %s2370_s11 = smov 116  }
 0x10d   : > { %v902_v52 = vmul.f32 %v900_v51, %v2980_v19  ;;  %v901_v53 = vmul.f32 %v900_v51, %v2978_v18  ;;  %v921_v55 = vmul.f32 %v919_v54, %v2980_v19  ;;  %v920_v56 = vmul.f32 %v919_v54, %v2978_v18  ;;  %s2377_s25 = smov 109   ;;  %s2378_s7 = smov 108  }
 0x10e   : > { %v938_v57 = vstv %s1833_s28  ;;  %v976_v63 = vstv %s1835_s20  ;;  %s2379_s28 = smov 107   ;;  %s2381_s20 = smov 105  }
 0x10f   : > { %v940_v58 = vmul.f32 %v938_v57, %v2980_v19  ;;  %v939_v59 = vmul.f32 %v938_v57, %v2978_v18  ;;  %v978_v0 = vmul.f32 %v976_v63, %v2980_v19  ;;  %v977_v1 = vmul.f32 %v976_v63, %v2978_v18 }
 0x110   : > { %736 = vrot.lane.b32.xlu1 %v731_v25, %s2361_s16  ;;  %734 = vrot.lane.b32.xlu0 %v730_v26, %s2361_s16  ;;  %s1836_s16 = sld [smem:[#allocation3 + $0x11]] }
 0x112   : > { %v957_v60 = vstv %s1834_s0  ;;  %s2380_s0 = smov 106  }
 0x113   : > { %v959_v61 = vmul.f32 %v957_v60, %v2980_v19  ;;  %v958_v62 = vmul.f32 %v957_v60, %v2978_v18 }
 0x114   : > { %755 = vrot.lane.b32.xlu1 %v750_v28, %s2362_s6  ;;  %753 = vrot.lane.b32.xlu0 %v749_v29, %s2362_s6  ;;  %s1837_s6 = sld [smem:[#allocation3 + $0x12]] }
 0x116   : > { %v995_v2 = vstv %s1836_s16  ;;  %s2382_s16 = smov 104  }
 0x117   : > { %v997_v3 = vmul.f32 %v995_v2, %v2980_v19  ;;  %v996_v4 = vmul.f32 %v995_v2, %v2978_v18 }
 0x118   : > { %774 = vrot.lane.b32.xlu1 %v769_v31, %s2363_s21  ;;  %772 = vrot.lane.b32.xlu0 %v768_v32, %s2363_s21  ;;  %s1838_s21 = sld [smem:[#allocation3 + $0x13]] }
 0x11a   : > { %v1014_v5 = vstv %s1837_s6  ;;  %s2383_s6 = smov 103  }
 0x11b   : > { %v1016_v6 = vmul.f32 %v1014_v5, %v2980_v19  ;;  %v1015_v7 = vmul.f32 %v1014_v5, %v2978_v18 }
 0x11c   : > { %793 = vrot.lane.b32.xlu1 %v788_v34, %s2364_s5  ;;  %791 = vrot.lane.b32.xlu0 %v787_v35, %s2364_s5  ;;  %s1839_s5 = sld [smem:[#allocation3 + $0x14]] }
 0x11e   : > { %v1033_v8 = vstv %s1838_s21  ;;  %s2384_s21 = smov 102  }
 0x11f   : > { %v1035_v9 = vmul.f32 %v1033_v8, %v2980_v19  ;;  %v1034_v10 = vmul.f32 %v1033_v8, %v2978_v18 }
 0x120   : > { %812 = vrot.lane.b32.xlu1 %v807_v37, %s2365_s22  ;;  %810 = vrot.lane.b32.xlu0 %v806_v38, %s2365_s22  ;;  %s1840_s22 = sld [smem:[#allocation3 + $0x15]] }
 0x122   : > { %v1052_v11 = vstv %s1839_s5  ;;  %s3036_s5 = sld [smem:[#allocation3]] }
 0x123   : > { %v1054_v12 = vmul.f32 %v1052_v11, %v2980_v19  ;;  %v1053_v13 = vmul.f32 %v1052_v11, %v2978_v18 }
 0x124   : > { %831 = vrot.lane.b32.xlu1 %v826_v40, %s2366_s9  ;;  %829 = vrot.lane.b32.xlu0 %v825_v41, %s2366_s9  ;;  %s1841_s9 = sld [smem:[#allocation3 + $0x16]] }
 0x126   : > { %v1071_v14 = vstv %s1840_s22  ;;  %s1850_s22 = sld [smem:[#allocation3 + $0x1f]] }
 0x127   : > { %v1073_v16 = vmul.f32 %v1071_v14, %v2980_v19  ;;  %v1072_v17 = vmul.f32 %v1071_v14, %v2978_v18 }
 0x128   : > { %850 = vrot.lane.b32.xlu1 %v845_v43, %s2367_s27  ;;  %848 = vrot.lane.b32.xlu0 %v844_v44, %s2367_s27  ;;  %s1842_s27 = sld [smem:[#allocation3 + $0x17]]  ;;  %v685_v45 = vstv %s3036_s5  ;;  %s2395_s5 = smov 91  }
 0x129   : > { %v686_v51 = vmul.f32 %v685_v45, %v2978_v18  ;;  %v687_v60 = vmul.f32 %v685_v45, %v2980_v19 }
 0x12a   : > { %v1090_v20 = vstv %s1841_s9  ;;  %s3042_s9 = sld [smem:[#allocation3 + $0x20]] }
 0x12b   : > { %v1092_v21 = vmul.f32 %v1090_v20, %v2980_v19  ;;  %v1091_v22 = vmul.f32 %v1090_v20, %v2978_v18 }
 0x12c   : > { %869 = vrot.lane.b32.xlu1 %v864_v46, %s2368_s13  ;;  %867 = vrot.lane.b32.xlu0 %v863_v47, %s2368_s13  ;;  %s1843_s13 = sld [smem:[#allocation3 + $0x18]]  ;;  %v1261_v48 = vstv %s1850_s22  ;;  %s2396_s22 = smov 90  }
 0x12d   : > { %v1263_v54 = vmul.f32 %v1261_v48, %v2980_v19 }
 0x12e   : > { %v1109_v23 = vstv %s1842_s27  ;;  %s3047_s27 = sld [smem:[#allocation3 + $0x21]] }
 0x12f   : > { %v1111_v24 = vmul.f32 %v1109_v23, %v2980_v19  ;;  %v1110_v25 = vmul.f32 %v1109_v23, %v2978_v18 }
 0x130   : > { %888 = vrot.lane.b32.xlu1 %v883_v49, %s2369_s1  ;;  %886 = vrot.lane.b32.xlu0 %v882_v50, %s2369_s1  ;;  %s1844_s1 = sld [smem:[#allocation3 + $0x19]]  ;;  %v1280_v57 = vstv %s3042_s9  ;;  %s2397_s9 = smov 89  }
 0x131   : > { %v1282_v2 = vmul.f32 %v1280_v57, %v2980_v19 }
 0x132   : > { %v1128_v26 = vstv %s1843_s13  ;;  %s3054_s13 = sld [smem:[#allocation3 + $0x22]] }
 0x133   : > { %v1130_v27 = vmul.f32 %v1128_v26, %v2980_v19  ;;  %v1129_v28 = vmul.f32 %v1128_v26, %v2978_v18 }
 0x134   : > { %907 = vrot.lane.b32.xlu1 %v902_v52, %s2370_s11  ;;  %905 = vrot.lane.b32.xlu0 %v901_v53, %s2370_s11  ;;  %s1845_s11 = sld [smem:[#allocation3 + $0x1a]]  ;;  %v1299_v5 = vstv %s3047_s27  ;;  %s2398_s27 = smov 88  }
 0x135   : > { %v1300_v14 = vmul.f32 %v1299_v5, %v2978_v18 }
 0x136   : > { %v1147_v29 = vstv %s1844_s1  ;;  %s3062_s1 = sld [smem:[#allocation3 + $0x23]] }
 0x137   : > { %v1149_v30 = vmul.f32 %v1147_v29, %v2980_v19  ;;  %v1148_v31 = vmul.f32 %v1147_v29, %v2978_v18 }
 0x138   : > { %926 = vrot.lane.b32.xlu1 %v921_v55, %s2371_s8  ;;  %924 = vrot.lane.b32.xlu0 %v920_v56, %s2371_s8  ;;  %s1846_s8 = sld [smem:[#allocation3 + $0x1b]]  ;;  %v1262_v55 = vmul.f32 %v1261_v48, %v2978_v18  ;;  %v1318_v20 = vstv %s3054_s13  ;;  %s2399_s13 = smov 87  }
 0x13a   : > { %v1166_v32 = vstv %s1845_s11  ;;  %s3068_s11 = sld [smem:[#allocation3 + $0x24]] }
 0x13b   : > { %v1168_v33 = vmul.f32 %v1166_v32, %v2980_v19  ;;  %v1167_v34 = vmul.f32 %v1166_v32, %v2978_v18 }
 0x13c   : > { %945 = vrot.lane.b32.xlu1 %v940_v58, %s2372_s10  ;;  %943 = vrot.lane.b32.xlu0 %v939_v59, %s2372_s10  ;;  %s1847_s10 = sld [smem:[#allocation3 + $0x1c]] }
 0x13e   : > { %v1185_v35 = vstv %s1846_s8  ;;  %s3073_s8 = sld [smem:[#allocation3 + $0x25]] }
 0x13f   : > { %v1187_v36 = vmul.f32 %v1185_v35, %v2980_v19  ;;  %v1186_v37 = vmul.f32 %v1185_v35, %v2978_v18 }
 0x140   : > { %964 = vrot.lane.b32.xlu1 %v959_v61, %s2373_s26  ;;  %962 = vrot.lane.b32.xlu0 %v958_v62, %s2373_s26  ;;  %s1848_s26 = sld [smem:[#allocation3 + $0x1d]] }
 0x142   : > { %v1204_v38 = vstv %s1847_s10  ;;  %s3078_s10 = sld [smem:[#allocation3 + $0x26]] }
 0x143   : > { %v1206_v39 = vmul.f32 %v1204_v38, %v2980_v19  ;;  %v1205_v40 = vmul.f32 %v1204_v38, %v2978_v18 }
 0x144   : > { %983 = vrot.lane.b32.xlu1 %v978_v0, %s2374_s24  ;;  %981 = vrot.lane.b32.xlu0 %v977_v1, %s2374_s24  ;;  %s1849_s24 = sld [smem:[#allocation3 + $0x1e]] }
 0x146   : > { %v1223_v41 = vstv %s1848_s26  ;;  %s3083_s26 = sld [smem:[#allocation3 + $0x27]] }
 0x147   : > { %v1225_v42 = vmul.f32 %v1223_v41, %v2980_v19  ;;  %v1224_v43 = vmul.f32 %v1223_v41, %v2978_v18 }
 0x148   : > { %1002 = vrot.lane.b32.xlu1 %v997_v3, %s2375_s19  ;;  %1000 = vrot.lane.b32.xlu0 %v996_v4, %s2375_s19  ;;  %s2385_s19 = smov 101   ;;  %v1281_v3 = vmul.f32 %v1280_v57, %v2978_v18 }
 0x14a   : > { %v1242_v44 = vstv %s1849_s24  ;;  %s3088_s24 = sld [smem:[#allocation3 + $0x28]] }
 0x14b   : > { %v1244_v46 = vmul.f32 %v1242_v44, %v2980_v19  ;;  %v1243_v47 = vmul.f32 %v1242_v44, %v2978_v18 }
 0x14c   : > { %1021 = vrot.lane.b32.xlu1 %v1016_v6, %s2376_s30  ;;  %1019 = vrot.lane.b32.xlu0 %v1015_v7, %s2376_s30  ;;  %s2386_s30 = smov 100  }
 0x150   : > { %1040 = vrot.lane.b32.xlu1 %v1035_v9, %s2377_s25  ;;  %1038 = vrot.lane.b32.xlu0 %v1034_v10, %s2377_s25  ;;  %s2387_s25 = smov 99  }
 0x154   : > { %1059 = vrot.lane.b32.xlu1 %v1054_v12, %s2378_s7  ;;  %1057 = vrot.lane.b32.xlu0 %v1053_v13, %s2378_s7  ;;  %s2388_s7 = smov 98   ;;  %v1301_v13 = vmul.f32 %v1299_v5, %v2980_v19 }
 0x158   : > { %1078 = vrot.lane.b32.xlu1 %v1073_v16, %s2379_s28  ;;  %1076 = vrot.lane.b32.xlu0 %v1072_v17, %s2379_s28  ;;  %s2389_s28 = smov 97  }
 0x15c   : > { %1097 = vrot.lane.b32.xlu1 %v1092_v21, %s2380_s0  ;;  %1095 = vrot.lane.b32.xlu0 %v1091_v22, %s2380_s0  ;;  %s2390_s0 = smov 96  }
 0x160   : > { %1116 = vrot.lane.b32.xlu1 %v1111_v24, %s2381_s20  ;;  %1114 = vrot.lane.b32.xlu0 %v1110_v25, %s2381_s20  ;;  %s2391_s20 = smov 95  }
 0x164   : > { %1135 = vrot.lane.b32.xlu1 %v1130_v27, %s2382_s16  ;;  %1133 = vrot.lane.b32.xlu0 %v1129_v28, %s2382_s16  ;;  %v1320_v27 = vmul.f32 %v1318_v20, %v2980_v19  ;;  %v1319_v28 = vmul.f32 %v1318_v20, %v2978_v18  ;;  %s2392_s16 = smov 94  }
 0x168   : > { %1154 = vrot.lane.b32.xlu1 %v1149_v30, %s2383_s6  ;;  %1152 = vrot.lane.b32.xlu0 %v1148_v31, %s2383_s6  ;;  %v1337_v31 = vstv %s3062_s1  ;;  %s2393_s6 = smov 93   ;;  %s2400_s1 = smov 86  }
 0x169   : > { %v1339_v38 = vmul.f32 %v1337_v31, %v2980_v19 }
 0x16c   : > { %1173 = vrot.lane.b32.xlu1 %v1168_v33, %s2384_s21  ;;  %1171 = vrot.lane.b32.xlu0 %v1167_v34, %s2384_s21  ;;  %s2394_s21 = smov 92  }
 0x170   : > { %1192 = vrot.lane.b32.xlu1 %v1187_v36, %s2385_s19  ;;  %1190 = vrot.lane.b32.xlu0 %v1186_v37, %s2385_s19  ;;  %s3093_s19 = sld [smem:[#allocation3 + $0x29]] }
 0x174   : > { %1211 = vrot.lane.b32.xlu1 %v1206_v39, %s2386_s30  ;;  %1209 = vrot.lane.b32.xlu0 %v1205_v40, %s2386_s30  ;;  %v1338_v39 = vmul.f32 %v1337_v31, %v2978_v18  ;;  %s3098_s30 = sld [smem:[#allocation3 + $0x2a]] }
 0x178   : > { %1230 = vrot.lane.b32.xlu1 %v1225_v42, %s2387_s25  ;;  %1228 = vrot.lane.b32.xlu0 %v1224_v43, %s2387_s25  ;;  %v1356_v42 = vstv %s3068_s11  ;;  %s3103_s25 = sld [smem:[#allocation3 + $0x2b]]  ;;  %s2401_s11 = smov 85  }
 0x17a   : > { %v716_v49 = vpop.permute.xlu1 %715  ;;  %v697_v50 = vpop.permute.xlu0 %696 }
 0x17b   : > { %v719_v52 = vrot.slane %v716_v49, 1  ;;  %v700_v53 = vrot.slane %v697_v50, 1 }
 0x17c   : > { %1249 = vrot.lane.b32.xlu1 %v1244_v46, %s2388_s7  ;;  %1247 = vrot.lane.b32.xlu0 %v1243_v47, %s2388_s7  ;;  %s3108_s7 = sld [smem:[#allocation3 + $0x2c]] }
 0x17d   : > { %v703_v56 = vsel %vm702_vm2, %v697_v50, %v700_v53  ;;  %v722_v62 = vsel %vm721_vm3, %v716_v49, %v719_v52  ;;  %v1358_v49 = vmul.f32 %v1356_v42, %v2980_v19  ;;  %v1357_v50 = vmul.f32 %v1356_v42, %v2978_v18 }
 0x17e   : > { %v707_v58 = vadd.f32 %v703_v56, %v686_v51  ;;  %v718_v59 = vpop.permute.xlu1 %717  ;;  %v699_v61 = vpop.permute.xlu0 %698  ;;  %v1375_v53 = vstv %s3073_s8  ;;  %s2402_s8 = smov 84  }
 0x17f   : > { %v720_v63 = vrot.slane %v718_v59, 1  ;;  %v701_v0 = vrot.slane %v699_v61, 1 }
 0x180   : > { %v726_v1 = vadd.f32 %v722_v62, %v707_v58  ;;  %1268 = vrot.lane.b32.xlu1 %v1263_v54, %s2389_s28  ;;  %1266 = vrot.lane.b32.xlu0 %v1262_v55, %s2389_s28  ;;  %s3113_s28 = sld [smem:[#allocation3 + $0x2d]] }
 0x181   : > { %v704_v4 = vsel %vm702_vm2, %v699_v61, %v701_v0  ;;  %v723_v9 = vsel %vm721_vm3, %v718_v59, %v720_v63  ;;  %v1376_v61 = vmul.f32 %v1375_v53, %v2978_v18  ;;  %v1394_v0 = vstv %s3078_s10  ;;  %s2404_s10 = smov 82  }
 0x182   : > { %v708_v6 = vadd.f32 %v704_v4, %v687_v60  ;;  %v737_v7 = vpop.permute.xlu1 %736  ;;  %v735_v8 = vpop.permute.xlu0 %734  ;;  %v1377_v60 = vmul.f32 %v1375_v53, %v2980_v19  ;;  %vm987_vm2 = vcmask 916480   ;;  %vm1006_vm3 = vcmask 908288  }
 0x183   : > { %v739_v10 = vrot.slane %v737_v7, 1  ;;  %v738_v11 = vrot.slane %v735_v8, 1 }
 0x184   : > { %v727_v12 = vadd.f32 %v723_v9, %v708_v6  ;;  %1287 = vrot.lane.b32.xlu1 %v1282_v2, %s2390_s0  ;;  %1285 = vrot.lane.b32.xlu0 %v1281_v3, %s2390_s0  ;;  %s3118_s0 = sld [smem:[#allocation3 + $0x2e]] }
 0x185   : > { %v742_v16 = vsel %vm740_vm4, %v737_v7, %v739_v10  ;;  %v741_v17 = vsel %vm740_vm4, %v735_v8, %v738_v11  ;;  %v1396_v7 = vmul.f32 %v1394_v0, %v2980_v19  ;;  %v1395_v8 = vmul.f32 %v1394_v0, %v2978_v18 }
 0x186   : > { %v746_v21 = vadd.f32 %v742_v16, %v727_v12  ;;  %v745_v22 = vadd.f32 %v741_v17, %v726_v1  ;;  %v756_v23 = vpop.permute.xlu1 %755  ;;  %v754_v24 = vpop.permute.xlu0 %753  ;;  %v1413_v11 = vstv %s3083_s26  ;;  %vm1025_vm4 = vcmask 900096   ;;  %s659_s26 = scalar_lea.vmem [#allocation8], %s2967_s29 }
 0x187   : > { %v758_v25 = vrot.slane %v756_v23, 1  ;;  %v757_v26 = vrot.slane %v754_v24, 1 }
 0x188   : > { %1306 = vrot.lane.b32.xlu1 %v1301_v13, %s2391_s20  ;;  %1304 = vrot.lane.b32.xlu0 %v1300_v14, %s2391_s20  ;;  %s3123_s20 = sld [smem:[#allocation3 + $0x2f]] }
 0x189   : > { %v761_v29 = vsel %vm759_vm5, %v756_v23, %v758_v25  ;;  %v760_v30 = vsel %vm759_vm5, %v754_v24, %v757_v26  ;;  %v1432_v25 = vstv %s3088_s24  ;;  %vm1044_vm5 = vcmask 891904   ;;  %s1880_s24 = sshll.u32 %s2461_s18, 6  ;;  %s3292_s18 = scalar_lea.sflag [#allocation4], %s625_s23 }
 0x18a   : > { %v765_v32 = vadd.f32 %v761_v29, %v746_v21  ;;  %v764_v33 = vadd.f32 %v760_v30, %v745_v22  ;;  %v775_v34 = vpop.permute.xlu1 %774  ;;  %v773_v35 = vpop.permute.xlu0 %772  ;;  %v1415_v21 = vmul.f32 %v1413_v11, %v2980_v19  ;;  %v1414_v22 = vmul.f32 %v1413_v11, %v2978_v18 }
 0x18b   : > { %v777_v36 = vrot.slane %v775_v34, 1  ;;  %v776_v37 = vrot.slane %v773_v35, 1 }
 0x18c   : > { %1325 = vrot.lane.b32.xlu1 %v1320_v27, %s2392_s16  ;;  %1323 = vrot.lane.b32.xlu0 %v1319_v28, %s2392_s16  ;;  %s2403_s16 = smov 83  }
 0x18d   : > { %v780_v40 = vsel %vm778_vm6, %v775_v34, %v777_v36  ;;  %v779_v41 = vsel %vm778_vm6, %v773_v35, %v776_v37  ;;  %v1451_v36 = vstv %s3093_s19  ;;  %vm1063_vm6 = vcmask 883712   ;;  %s3284_s19 = scalar_lea.hbm %s3342_s3, %s1880_s24 }
 0x18e   : > { %v784_v43 = vadd.f32 %v780_v40, %v765_v32  ;;  %v783_v44 = vadd.f32 %v779_v41, %v764_v33  ;;  %v794_v45 = vpop.permute.xlu1 %793  ;;  %v792_v46 = vpop.permute.xlu0 %791  ;;  %v1434_v32 = vmul.f32 %v1432_v25, %v2980_v19  ;;  %v1433_v33 = vmul.f32 %v1432_v25, %v2978_v18 }
 0x18f   : > { %v796_v47 = vrot.slane %v794_v45, 1  ;;  %v795_v48 = vrot.slane %v792_v46, 1 }
 0x190   : > { %1344 = vrot.lane.b32.xlu1 %v1339_v38, %s2393_s6  ;;  %1342 = vrot.lane.b32.xlu0 %v1338_v39, %s2393_s6  ;;  %s2405_s6 = smov 81  }
 0x191   : > { %v799_v51 = vsel %vm797_vm7, %v794_v45, %v796_v47  ;;  %v798_v52 = vsel %vm797_vm7, %v792_v46, %v795_v48  ;;  %v1470_v47 = vstv %s3098_s30  ;;  %vm1082_vm7 = vcmask 875520   ;;  %s2406_s30 = smov [#allocation8]  }
 0x192   : > { %v803_v54 = vadd.f32 %v799_v51, %v784_v43  ;;  %v802_v55 = vadd.f32 %v798_v52, %v783_v44  ;;  %v813_v56 = vpop.permute.xlu1 %812  ;;  %v811_v57 = vpop.permute.xlu0 %810  ;;  %v1453_v43 = vmul.f32 %v1451_v36, %v2980_v19  ;;  %v1452_v44 = vmul.f32 %v1451_v36, %v2978_v18 }
 0x193   : > { %v815_v58 = vrot.slane %v813_v56, 1  ;;  %v814_v59 = vrot.slane %v811_v57, 1 }
 0x194   : > { %1363 = vrot.lane.b32.xlu1 %v1358_v49, %s2394_s21  ;;  %1361 = vrot.lane.b32.xlu0 %v1357_v50, %s2394_s21  ;;  %s1599_s21 = sshll.u32 %s659_s26, 4  ;;  %s3279_s21 = int_to_ptr.vmem [resolvable:$true] %s1599_s21 }
 0x195   : > { %v818_v62 = vsel %vm816_vm8, %v813_v56, %v815_v58  ;;  %v817_v63 = vsel %vm816_vm8, %v811_v57, %v814_v59  ;;  %v1489_v58 = vstv %s3103_s25  ;;  %vm1101_vm8 = vcmask 867328  }
 0x196   : > { %v822_v1 = vadd.f32 %v818_v62, %v803_v54  ;;  %v821_v2 = vadd.f32 %v817_v63, %v802_v55  ;;  %v832_v3 = vpop.permute.xlu1 %831  ;;  %v830_v4 = vpop.permute.xlu0 %829  ;;  %v1472_v54 = vmul.f32 %v1470_v47, %v2980_v19  ;;  %v1471_v55 = vmul.f32 %v1470_v47, %v2978_v18 }
 0x197   : > { %v834_v5 = vrot.slane %v832_v3, 1  ;;  %v833_v6 = vrot.slane %v830_v4, 1 }
 0x198   : > { %1382 = vrot.lane.b32.xlu1 %v1377_v60, %s2395_s5  ;;  %1380 = vrot.lane.b32.xlu0 %v1376_v61, %s2395_s5 }
 0x199   : > { %v837_v9 = vsel %vm835_vm9, %v832_v3, %v834_v5  ;;  %v836_v10 = vsel %vm835_vm9, %v830_v4, %v833_v6  ;;  %v1508_v5 = vstv %s3108_s7  ;;  %vm1120_vm9 = vcmask 859136  }
 0x19a   : > { %v841_v12 = vadd.f32 %v837_v9, %v822_v1  ;;  %v840_v13 = vadd.f32 %v836_v10, %v821_v2  ;;  %v851_v14 = vpop.permute.xlu1 %850  ;;  %v849_v16 = vpop.permute.xlu0 %848  ;;  %v1491_v1 = vmul.f32 %v1489_v58, %v2980_v19  ;;  %v1490_v2 = vmul.f32 %v1489_v58, %v2978_v18 }
 0x19b   : > { %v853_v17 = vrot.slane %v851_v14, 1  ;;  %v852_v20 = vrot.slane %v849_v16, 1 }
 0x19c   : > { %1401 = vrot.lane.b32.xlu1 %v1396_v7, %s2396_s22  ;;  %1399 = vrot.lane.b32.xlu0 %v1395_v8, %s2396_s22  ;;  %s2144_s22 = scalar_lea.vmem %s3279_s21, 128 }
 0x19d   : > { %v856_v23 = vsel %vm854_vm10, %v851_v14, %v853_v17  ;;  %v855_v24 = vsel %vm854_vm10, %v849_v16, %v852_v20  ;;  %v1527_v17 = vstv %s3113_s28  ;;  %vm1139_vm10 = vcmask 850944   ;;  %p2145_p1 = scmp.ne.s32.totalorder %s3279_s21, %s2144_s22 }
 0x19e   : > { %v860_v26 = vadd.f32 %v856_v23, %v841_v12  ;;  %v859_v27 = vadd.f32 %v855_v24, %v840_v13  ;;  %v870_v28 = vpop.permute.xlu1 %869  ;;  %v868_v29 = vpop.permute.xlu0 %867  ;;  %v1510_v12 = vmul.f32 %v1508_v5, %v2980_v19  ;;  %v1509_v13 = vmul.f32 %v1508_v5, %v2978_v18 }
 0x19f   : > { %v872_v30 = vrot.slane %v870_v28, 1  ;;  %v871_v31 = vrot.slane %v868_v29, 1  ;;  %p2146_p6 = pnand %p2145_p1, %p3377_p2 }
 0x1a0   : > { %1420 = vrot.lane.b32.xlu1 %v1415_v21, %s2397_s9  ;;  %1418 = vrot.lane.b32.xlu0 %v1414_v22, %s2397_s9  ;;  %s2148_s9 = sshll.u32 %s2406_s30, 4  ;;  %s2149_s9 = int_to_ptr.vmem [resolvable:$false] %s2148_s9 }
 0x1a1   : > { %v875_v34 = vsel %vm873_vm11, %v870_v28, %v872_v30  ;;  %v874_v35 = vsel %vm873_vm11, %v868_v29, %v871_v31  ;;  %v1546_v30 = vstv %s3118_s0  ;;  %vm1158_vm11 = vcmask 842752   ;;  %p2147_p9 = pneg %p2146_p6  ;;  %s2150_s25 = scalar_lea.vmem %s2149_s9, 256 }
 0x1a2   : > { %v879_v37 = vadd.f32 %v875_v34, %v860_v26  ;;  %v878_v38 = vadd.f32 %v874_v35, %v859_v27  ;;  %v889_v39 = vpop.permute.xlu1 %888  ;;  %v887_v40 = vpop.permute.xlu0 %886  ;;  %v1529_v26 = vmul.f32 %v1527_v17, %v2980_v19  ;;  %v1528_v27 = vmul.f32 %v1527_v17, %v2978_v18  ;;  %p2151_p10 = scmp.lt.s32.totalorder %s3279_s21, %s2149_s9  ;;  %p2152_p11 = scmp.lt.s32.totalorder %s2150_s25, %s2144_s22 }
 0x1a3   : > { %v891_v41 = vrot.slane %v889_v39, 1  ;;  %v890_v42 = vrot.slane %v887_v40, 1 }
 0x1a4   : > { %1439 = vrot.lane.b32.xlu1 %v1434_v32, %s2398_s27  ;;  %1437 = vrot.lane.b32.xlu0 %v1433_v33, %s2398_s27  ;;  %p2153_p12 = por %p2152_p11, %p2151_p10 }
 0x1a5   : > { %v894_v45 = vsel %vm892_vm12, %v889_v39, %v891_v41  ;;  %v893_v46 = vsel %vm892_vm12, %v887_v40, %v890_v42  ;;  %v1565_v41 = vstv %s3123_s20  ;;  %vm1177_vm12 = vcmask 834560  }
 0x1a6   : > { %v898_v48 = vadd.f32 %v894_v45, %v879_v37  ;;  %v897_v49 = vadd.f32 %v893_v46, %v878_v38  ;;  %v908_v50 = vpop.permute.xlu1 %907  ;;  %v906_v51 = vpop.permute.xlu0 %905  ;;  %v1548_v37 = vmul.f32 %v1546_v30, %v2980_v19  ;;  %v1547_v38 = vmul.f32 %v1546_v30, %v2978_v18  ;;  %p2154_p0 = pnand %p2153_p12, %p2147_p9 }
 0x1a7   : > { %v910_v52 = vrot.slane %v908_v50, 1  ;;  %v909_v53 = vrot.slane %v906_v51, 1  ;;  %v1567_v46 = vmul.f32 %v1565_v41, %v2980_v19  ;;  %v1566_v47 = vmul.f32 %v1565_v41, %v2978_v18 }
 0x1a8   : > { %1458 = vrot.lane.b32.xlu1 %v1453_v43, %s2399_s13  ;;  %1456 = vrot.lane.b32.xlu0 %v1452_v44, %s2399_s13 }
 0x1a9   : > { %v913_v56 = vsel %vm911_vm13, %v908_v50, %v910_v52  ;;  %v912_v57 = vsel %vm911_vm13, %v906_v51, %v909_v53  ;;  %vm1196_vm13 = vcmask 826368  }
 0x1aa   : > { %v917_v59 = vadd.f32 %v913_v56, %v898_v48  ;;  %v916_v60 = vadd.f32 %v912_v57, %v897_v49  ;;  %v927_v61 = vpop.permute.xlu1 %926  ;;  %v925_v62 = vpop.permute.xlu0 %924 }
 0x1ab   : > { %v929_v63 = vrot.slane %v927_v61, 1  ;;  %v928_v0 = vrot.slane %v925_v62, 1 }
 0x1ac   : > { %1477 = vrot.lane.b32.xlu1 %v1472_v54, %s2400_s1  ;;  %1475 = vrot.lane.b32.xlu0 %v1471_v55, %s2400_s1 }
 0x1ad   : > { %v932_v3 = vsel %vm930_vm14, %v927_v61, %v929_v63  ;;  %v931_v4 = vsel %vm930_vm14, %v925_v62, %v928_v0  ;;  %vm1215_vm14 = vcmask 818176  }
 0x1ae   : > { %v936_v6 = vadd.f32 %v932_v3, %v917_v59  ;;  %v935_v7 = vadd.f32 %v931_v4, %v916_v60  ;;  %v946_v8 = vpop.permute.xlu1 %945  ;;  %v944_v9 = vpop.permute.xlu0 %943 }
 0x1af   : > { %v948_v10 = vrot.slane %v946_v8, 1  ;;  %v947_v11 = vrot.slane %v944_v9, 1 }
 0x1b0   : > { %1496 = vrot.lane.b32.xlu1 %v1491_v1, %s2401_s11  ;;  %1494 = vrot.lane.b32.xlu0 %v1490_v2, %s2401_s11 }
 0x1b1   : > { %v951_v14 = vsel %vm949_vm15, %v946_v8, %v948_v10  ;;  %v950_v16 = vsel %vm949_vm15, %v944_v9, %v947_v11  ;;  %vm1234_vm15 = vcmask 809984  }
 0x1b2   : > { %v955_v20 = vadd.f32 %v951_v14, %v936_v6  ;;  %v954_v21 = vadd.f32 %v950_v16, %v935_v7  ;;  %v965_v22 = vpop.permute.xlu1 %964  ;;  %v963_v23 = vpop.permute.xlu0 %962 }
 0x1b3   : > { %v967_v24 = vrot.slane %v965_v22, 1  ;;  %v966_v25 = vrot.slane %v963_v23, 1 }
 0x1b4   : > { %1515 = vrot.lane.b32.xlu1 %v1510_v12, %s2402_s8  ;;  %1513 = vrot.lane.b32.xlu0 %v1509_v13, %s2402_s8 }
 0x1b5   : > { %v970_v28 = vsel %vm968_vm1, %v965_v22, %v967_v24  ;;  %v969_v29 = vsel %vm968_vm1, %v963_v23, %v966_v25  ;;  %vm1253_vm1 = vcmask 801792  }
 0x1b6   : > { %v974_v31 = vadd.f32 %v970_v28, %v955_v20  ;;  %v973_v32 = vadd.f32 %v969_v29, %v954_v21  ;;  %v984_v33 = vpop.permute.xlu1 %983  ;;  %v982_v34 = vpop.permute.xlu0 %981 }
 0x1b7   : > { %v986_v35 = vrot.slane %v984_v33, 1  ;;  %v985_v36 = vrot.slane %v982_v34, 1 }
 0x1b8   : > { %1534 = vrot.lane.b32.xlu1 %v1529_v26, %s2403_s16  ;;  %1532 = vrot.lane.b32.xlu0 %v1528_v27, %s2403_s16 }
 0x1b9   : > { %v989_v39 = vsel %vm987_vm2, %v984_v33, %v986_v35  ;;  %v988_v40 = vsel %vm987_vm2, %v982_v34, %v985_v36  ;;  %vm1272_vm2 = vcmask 793600  }
 0x1ba   : > { %v993_v42 = vadd.f32 %v989_v39, %v974_v31  ;;  %v992_v43 = vadd.f32 %v988_v40, %v973_v32  ;;  %v1003_v44 = vpop.permute.xlu1 %1002  ;;  %v1001_v45 = vpop.permute.xlu0 %1000 }
 0x1bb   : > { %v1005_v10 = vrot.slane %v1003_v44, 1  ;;  %v1004_v11 = vrot.slane %v1001_v45, 1 }
 0x1bc   : > { %1553 = vrot.lane.b32.xlu1 %v1548_v37, %s2404_s10  ;;  %1551 = vrot.lane.b32.xlu0 %v1547_v38, %s2404_s10 }
 0x1bd   : > { %v1008_v17 = vsel %vm1006_vm3, %v1003_v44, %v1005_v10  ;;  %v1007_v20 = vsel %vm1006_vm3, %v1001_v45, %v1004_v11  ;;  %vm1291_vm3 = vcmask 785408  }
 0x1be   : > { %v1022_v48 = vpop.permute.xlu1 %1021  ;;  %v1020_v49 = vpop.permute.xlu0 %1019  ;;  %v1012_v27 = vadd.f32 %v1008_v17, %v993_v42  ;;  %v1011_v28 = vadd.f32 %v1007_v20, %v992_v43 }
 0x1bf   : > { %v1024_v12 = vrot.slane %v1022_v48, 1  ;;  %v1023_v13 = vrot.slane %v1020_v49, 1 }
 0x1c0   : > { %1572 = vrot.lane.b32.xlu1 %v1567_v46, %s2405_s6  ;;  %1570 = vrot.lane.b32.xlu0 %v1566_v47, %s2405_s6 }
 0x1c1   : > { %v1027_v23 = vsel %vm1025_vm4, %v1022_v48, %v1024_v12  ;;  %v1026_v24 = vsel %vm1025_vm4, %v1020_v49, %v1023_v13  ;;  %vm1310_vm4 = vcmask 777216  }
 0x1c2   : > { %v1041_v50 = vpop.permute.xlu1 %1040  ;;  %v1039_v51 = vpop.permute.xlu0 %1038  ;;  %v1031_v35 = vadd.f32 %v1027_v23, %v1012_v27  ;;  %v1030_v36 = vadd.f32 %v1026_v24, %v1011_v28 }
 0x1c3   : > { %v1043_v21 = vrot.slane %v1041_v50, 1  ;;  %v1042_v22 = vrot.slane %v1039_v51, 1 }
 0x1c5   : > { %v1046_v31 = vsel %vm1044_vm5, %v1041_v50, %v1043_v21  ;;  %v1045_v32 = vsel %vm1044_vm5, %v1039_v51, %v1042_v22  ;;  %vm1329_vm5 = vcmask 769024  }
 0x1c6   : > { %v1060_v52 = vpop.permute.xlu1 %1059  ;;  %v1058_v53 = vpop.permute.xlu0 %1057  ;;  %v1050_v41 = vadd.f32 %v1046_v31, %v1031_v35  ;;  %v1049_v42 = vadd.f32 %v1045_v32, %v1030_v36 }
 0x1c7   : > { %v1062_v25 = vrot.slane %v1060_v52, 1  ;;  %v1061_v26 = vrot.slane %v1058_v53, 1 }
 0x1c9   : > { %v1065_v37 = vsel %vm1063_vm6, %v1060_v52, %v1062_v25  ;;  %v1064_v38 = vsel %vm1063_vm6, %v1058_v53, %v1061_v26  ;;  %vm1348_vm6 = vcmask 760832  }
 0x1ca   : > { %v1079_v54 = vpop.permute.xlu1 %1078  ;;  %v1077_v55 = vpop.permute.xlu0 %1076  ;;  %v1069_v49 = vadd.f32 %v1065_v37, %v1050_v41  ;;  %v1068_v50 = vadd.f32 %v1064_v38, %v1049_v42 }
 0x1cb   : > { %v1081_v33 = vrot.slane %v1079_v54, 1  ;;  %v1080_v34 = vrot.slane %v1077_v55, 1 }
 0x1cd   : > { %v1084_v45 = vsel %vm1082_vm7, %v1079_v54, %v1081_v33  ;;  %v1083_v46 = vsel %vm1082_vm7, %v1077_v55, %v1080_v34  ;;  %vm1367_vm7 = vcmask 752640  }
 0x1ce   : > { %v3133_v56 = vpop.permute.xlu1 %1097  ;;  %v3135_v57 = vpop.permute.xlu0 %1095  ;;  %v1088_v11 = vadd.f32 %v1084_v45, %v1069_v49  ;;  %v1087_v12 = vadd.f32 %v1083_v46, %v1068_v50 }
 0x1cf   : > { %v1100_v39 = vrot.slane %v3133_v56, 1  ;;  %v1099_v40 = vrot.slane %v3135_v57, 1 }
 0x1d1   : > { %v1103_v51 = vsel %vm1101_vm8, %v3133_v56, %v1100_v39  ;;  %v1102_v52 = vsel %vm1101_vm8, %v3135_v57, %v1099_v40  ;;  %vm1386_vm8 = vcmask 744448  }
 0x1d2   : > { %v3137_v58 = vpop.permute.xlu1 %1116  ;;  %v3139_v19 = vpop.permute.xlu0 %1114  ;;  %v1107_v57 = vadd.f32 %v1103_v51, %v1088_v11  ;;  %v1106_v21 = vadd.f32 %v1102_v52, %v1087_v12 }
 0x1d3   : > { %v1119_v47 = vrot.slane %v3137_v58, 1  ;;  %v1118_v48 = vrot.slane %v3139_v19, 1 }
 0x1d5   : > { %v1122_v13 = vsel %vm1120_vm9, %v3137_v58, %v1119_v47  ;;  %v1121_v17 = vsel %vm1120_vm9, %v3139_v19, %v1118_v48  ;;  %vm1405_vm9 = vcmask 736256  }
 0x1d6   : > { %v3141_v18 = vpop.permute.xlu1 %1135  ;;  %v3143_v59 = vpop.permute.xlu0 %1133  ;;  %v1126_v26 = vadd.f32 %v1122_v13, %v1107_v57  ;;  %v1125_v27 = vadd.f32 %v1121_v17, %v1106_v21 }
 0x1d7   : > { %v1138_v53 = vrot.slane %v3141_v18, 1  ;;  %v1137_v10 = vrot.slane %v3143_v59, 1 }
 0x1d9   : > { %v1141_v22 = vsel %vm1139_vm10, %v3141_v18, %v1138_v53  ;;  %v1140_v23 = vsel %vm1139_vm10, %v3143_v59, %v1137_v10  ;;  %vm1424_vm10 = vcmask 728064  }
 0x1da   : > { %v3145_v60 = vpop.permute.xlu1 %1154  ;;  %v3147_v61 = vpop.permute.xlu0 %1152  ;;  %v1145_v59 = vadd.f32 %v1141_v22, %v1126_v26  ;;  %v1144_v33 = vadd.f32 %v1140_v23, %v1125_v27 }
 0x1db   : > { %v1157_v20 = vrot.slane %v3145_v60, 1  ;;  %v1156_v56 = vrot.slane %v3147_v61, 1 }
 0x1dd   : > { %v1160_v28 = vsel %vm1158_vm11, %v3145_v60, %v1157_v20  ;;  %v1159_v31 = vsel %vm1158_vm11, %v3147_v61, %v1156_v56  ;;  %vm1443_vm11 = vcmask 719872  }
 0x1de   : > { %v3149_v62 = vpop.permute.xlu1 %1173  ;;  %v3151_v63 = vpop.permute.xlu0 %1171  ;;  %v1164_v38 = vadd.f32 %v1160_v28, %v1145_v59  ;;  %v1163_v39 = vadd.f32 %v1159_v31, %v1144_v33 }
 0x1df   : > { %v1176_v24 = vrot.slane %v3149_v62, 1  ;;  %v1175_v25 = vrot.slane %v3151_v63, 1 }
 0x1e1   : > { %v1179_v34 = vsel %vm1177_vm12, %v3149_v62, %v1176_v24  ;;  %v1178_v35 = vsel %vm1177_vm12, %v3151_v63, %v1175_v25  ;;  %vm1462_vm12 = vcmask 711680  }
 0x1e2   : > { %v3153_v0 = vpop.permute.xlu1 %1192  ;;  %v3155_v1 = vpop.permute.xlu0 %1190  ;;  %v1183_v63 = vadd.f32 %v1179_v34, %v1164_v38  ;;  %v1182_v45 = vadd.f32 %v1178_v35, %v1163_v39 }
 0x1e3   : > { %v1195_v32 = vrot.slane %v3153_v0, 1  ;;  %v1194_v18 = vrot.slane %v3155_v1, 1 }
 0x1e5   : > { %v1198_v40 = vsel %vm1196_vm13, %v3153_v0, %v1195_v32  ;;  %v1197_v41 = vsel %vm1196_vm13, %v3155_v1, %v1194_v18  ;;  %vm1481_vm13 = vcmask 703488  }
 0x1e6   : > { %v3157_v2 = vpop.permute.xlu1 %1211  ;;  %v3159_v3 = vpop.permute.xlu0 %1209  ;;  %v1202_v50 = vadd.f32 %v1198_v40, %v1183_v63  ;;  %v1201_v51 = vadd.f32 %v1197_v41, %v1182_v45 }
 0x1e7   : > { %v1214_v36 = vrot.slane %v3157_v2, 1  ;;  %v1213_v37 = vrot.slane %v3159_v3, 1 }
 0x1e9   : > { %v1217_v46 = vsel %vm1215_vm14, %v3157_v2, %v1214_v36  ;;  %v1216_v47 = vsel %vm1215_vm14, %v3159_v3, %v1213_v37  ;;  %vm1500_vm14 = vcmask 695296  }
 0x1ea   : > { %v3161_v4 = vpop.permute.xlu1 %1230  ;;  %v3163_v5 = vpop.permute.xlu0 %1228  ;;  %v1221_v3 = vadd.f32 %v1217_v46, %v1202_v50  ;;  %v1220_v11 = vadd.f32 %v1216_v47, %v1201_v51 }
 0x1eb   : > { %v1233_v42 = vrot.slane %v3161_v4, 1  ;;  %v1232_v62 = vrot.slane %v3163_v5, 1 }
 0x1ed   : > { %v1236_v52 = vsel %vm1234_vm15, %v3161_v4, %v1233_v42  ;;  %v1235_v53 = vsel %vm1234_vm15, %v3163_v5, %v1232_v62  ;;  %vm1519_vm15 = vcmask 687104  }
 0x1ee   : > { %v3165_v6 = vpop.permute.xlu1 %1249  ;;  %v3167_v7 = vpop.permute.xlu0 %1247  ;;  %v1240_v56 = vadd.f32 %v1236_v52, %v1221_v3  ;;  %v1239_v57 = vadd.f32 %v1235_v53, %v1220_v11 }
 0x1ef   : > { %v1252_v48 = vrot.slane %v3165_v6, 1  ;;  %v1251_v49 = vrot.slane %v3167_v7, 1 }
 0x1f1   : > { %v1255_v12 = vsel %vm1253_vm1, %v3165_v6, %v1252_v48  ;;  %v1254_v13 = vsel %vm1253_vm1, %v3167_v7, %v1251_v49  ;;  %vm1538_vm1 = vcmask 678912  }
 0x1f2   : > { %v3169_v8 = vpop.permute.xlu1 %1268  ;;  %v3171_v9 = vpop.permute.xlu0 %1266  ;;  %v1259_v7 = vadd.f32 %v1255_v12, %v1240_v56  ;;  %v1258_v24 = vadd.f32 %v1254_v13, %v1239_v57 }
 0x1f3   : > { %v1271_v10 = vrot.slane %v3169_v8, 1  ;;  %v1270_v2 = vrot.slane %v3171_v9, 1 }
 0x1f5   : > { %v1274_v21 = vsel %vm1272_vm2, %v3169_v8, %v1271_v10  ;;  %v1273_v22 = vsel %vm1272_vm2, %v3171_v9, %v1270_v2  ;;  %vm1557_vm2 = vcmask 670720  }
 0x1f6   : > { %v3173_v14 = vpop.permute.xlu1 %1287  ;;  %v3175_v16 = vpop.permute.xlu0 %1285  ;;  %v1278_v31 = vadd.f32 %v1274_v21, %v1259_v7  ;;  %v1277_v32 = vadd.f32 %v1273_v22, %v1258_v24 }
 0x1f7   : > { %v1290_v17 = vrot.slane %v3173_v14, 1  ;;  %v1289_v20 = vrot.slane %v3175_v16, 1 }
 0x1f9   : > { %v1293_v25 = vsel %vm1291_vm3, %v3173_v14, %v1290_v17  ;;  %v1292_v26 = vsel %vm1291_vm3, %v3175_v16, %v1289_v20  ;;  %vm1576_vm3 = vcmask 662528  }
 0x1fa   : > { %v3177_v29 = vpop.permute.xlu1 %1306  ;;  %v3179_v30 = vpop.permute.xlu0 %1304  ;;  %v1297_v14 = vadd.f32 %v1293_v25, %v1278_v31  ;;  %v1296_v35 = vadd.f32 %v1292_v26, %v1277_v32 }
 0x1fb   : > { %v1309_v23 = vrot.slane %v3177_v29, 1  ;;  %v1308_v6 = vrot.slane %v3179_v30, 1 }
 0x1fd   : > { %v1312_v18 = vsel %vm1310_vm4, %v3177_v29, %v1309_v23  ;;  %v1311_v59 = vsel %vm1310_vm4, %v3179_v30, %v1308_v6 }
 0x1fe   : > { %v3183_v43 = vpop.permute.xlu1 %1325  ;;  %v3185_v44 = vpop.permute.xlu0 %1323  ;;  %v1316_v39 = vadd.f32 %v1312_v18, %v1297_v14  ;;  %v1315_v40 = vadd.f32 %v1311_v59, %v1296_v35 }
 0x1ff   : > { %v1328_v27 = vrot.slane %v3183_v43, 1  ;;  %v1327_v28 = vrot.slane %v3185_v44, 1 }
 0x201   : > { %v1331_v16 = vsel %vm1329_vm5, %v3183_v43, %v1328_v27  ;;  %v1330_v36 = vsel %vm1329_vm5, %v3185_v44, %v1327_v28 }
 0x202   : > { %v3193_v54 = vpop.permute.xlu1 %1344  ;;  %v3195_v55 = vpop.permute.xlu0 %1342  ;;  %v1335_v43 = vadd.f32 %v1331_v16, %v1316_v39  ;;  %v1334_v45 = vadd.f32 %v1330_v36, %v1315_v40 }
 0x203   : > { %v1347_v33 = vrot.slane %v3193_v54, 1  ;;  %v1346_v34 = vrot.slane %v3195_v55, 1 }
 0x205   : > { %v1350_v41 = vsel %vm1348_vm6, %v3193_v54, %v1347_v33  ;;  %v1349_v42 = vsel %vm1348_vm6, %v3195_v55, %v1346_v34 }
 0x206   : > { %v3205_v58 = vpop.permute.xlu1 %1363  ;;  %v3207_v19 = vpop.permute.xlu0 %1361  ;;  %v1354_v49 = vadd.f32 %v1350_v41, %v1335_v43  ;;  %v1353_v50 = vadd.f32 %v1349_v42, %v1334_v45 }
 0x207   : > { %v1366_v37 = vrot.slane %v3205_v58, 1  ;;  %v1365_v38 = vrot.slane %v3207_v19, 1 }
 0x209   : > { %v1369_v44 = vsel %vm1367_vm7, %v3205_v58, %v1366_v37  ;;  %v1368_v46 = vsel %vm1367_vm7, %v3207_v19, %v1365_v38 }
 0x20a   : > { %v3217_v60 = vpop.permute.xlu1 %1382  ;;  %v3219_v61 = vpop.permute.xlu0 %1380  ;;  %v1373_v58 = vadd.f32 %v1369_v44, %v1354_v49  ;;  %v1372_v2 = vadd.f32 %v1368_v46, %v1353_v50 }
 0x20b   : > { %v1385_v62 = vrot.slane %v3217_v60, 1  ;;  %v1384_v63 = vrot.slane %v3219_v61, 1 }
 0x20d   : > { %v1388_v51 = vsel %vm1386_vm8, %v3217_v60, %v1385_v62  ;;  %v1387_v52 = vsel %vm1386_vm8, %v3219_v61, %v1384_v63 }
 0x20e   : > { %v3229_v0 = vpop.permute.xlu1 %1401  ;;  %v3231_v1 = vpop.permute.xlu0 %1399  ;;  %v1392_v13 = vadd.f32 %v1388_v51, %v1373_v58  ;;  %v1391_v17 = vadd.f32 %v1387_v52, %v1372_v2 }
 0x20f   : > { %v1404_v47 = vrot.slane %v3229_v0, 1  ;;  %v1403_v48 = vrot.slane %v3231_v1, 1 }
 0x211   : > { %v1407_v19 = vsel %vm1405_vm9, %v3229_v0, %v1404_v47  ;;  %v1406_v3 = vsel %vm1405_vm9, %v3231_v1, %v1403_v48 }
 0x212   : > { %v3241_v4 = vpop.permute.xlu1 %1420  ;;  %v3243_v5 = vpop.permute.xlu0 %1418  ;;  %v1411_v22 = vadd.f32 %v1407_v19, %v1392_v13  ;;  %v1410_v23 = vadd.f32 %v1406_v3, %v1391_v17 }
 0x213   : > { %v1423_v53 = vrot.slane %v3241_v4, 1  ;;  %v1422_v10 = vrot.slane %v3243_v5, 1 }
 0x215   : > { %v1426_v61 = vsel %vm1424_vm10, %v3241_v4, %v1423_v53  ;;  %v1425_v56 = vsel %vm1424_vm10, %v3243_v5, %v1422_v10 }
 0x216   : > { %v1440_v8 = vpop.permute.xlu1 %1439  ;;  %v1438_v9 = vpop.permute.xlu0 %1437  ;;  %v1430_v24 = vadd.f32 %v1426_v61, %v1411_v22  ;;  %v1429_v25 = vadd.f32 %v1425_v56, %v1410_v23 }
 0x217   : > { %v1442_v11 = vrot.slane %v1440_v8, 1  ;;  %v1441_v12 = vrot.slane %v1438_v9, 1 }
 0x219   : > { %v1445_v6 = vsel %vm1443_vm11, %v1440_v8, %v1442_v11  ;;  %v1444_v0 = vsel %vm1443_vm11, %v1438_v9, %v1441_v12 }
 0x21a   : > { %v1459_v29 = vpop.permute.xlu1 %1458  ;;  %v1457_v30 = vpop.permute.xlu0 %1456  ;;  %v1449_v18 = vadd.f32 %v1445_v6, %v1430_v24  ;;  %v1448_v5 = vadd.f32 %v1444_v0, %v1429_v25 }
 0x21b   : > { %v1461_v57 = vrot.slane %v1459_v29, 1  ;;  %v1460_v21 = vrot.slane %v1457_v30, 1 }
 0x21d   : > { %v1464_v28 = vsel %vm1462_vm12, %v1459_v29, %v1461_v57  ;;  %v1463_v31 = vsel %vm1462_vm12, %v1457_v30, %v1460_v21 }
 0x21e   : > { %v1478_v54 = vpop.permute.xlu1 %1477  ;;  %v1476_v55 = vpop.permute.xlu0 %1475  ;;  %v1468_v8 = vadd.f32 %v1464_v28, %v1449_v18  ;;  %v1467_v9 = vadd.f32 %v1463_v31, %v1448_v5 }
 0x21f   : > { %v1480_v7 = vrot.slane %v1478_v54, 1  ;;  %v1479_v1 = vrot.slane %v1476_v55, 1 }
 0x221   : > { %v1483_v59 = vsel %vm1481_vm13, %v1478_v54, %v1480_v7  ;;  %v1482_v33 = vsel %vm1481_vm13, %v1476_v55, %v1479_v1 }
 0x222   : > { %v1497_v20 = vpop.permute.xlu1 %1496  ;;  %v1495_v60 = vpop.permute.xlu0 %1494  ;;  %v1487_v40 = vadd.f32 %v1483_v59, %v1468_v8  ;;  %v1486_v29 = vadd.f32 %v1482_v33, %v1467_v9 }
 0x223   : > { %v1499_v32 = vrot.slane %v1497_v20, 1  ;;  %v1498_v4 = vrot.slane %v1495_v60, 1 }
 0x225   : > { %v1502_v36 = vsel %vm1500_vm14, %v1497_v20, %v1499_v32  ;;  %v1501_v37 = vsel %vm1500_vm14, %v1495_v60, %v1498_v4 }
 0x226   : > { %v1516_v26 = vpop.permute.xlu1 %1515  ;;  %v1514_v27 = vpop.permute.xlu0 %1513  ;;  %v1506_v42 = vadd.f32 %v1502_v36, %v1487_v40  ;;  %v1505_v62 = vadd.f32 %v1501_v37, %v1486_v29 }
 0x227   : > { %v1518_v34 = vrot.slane %v1516_v26, 1  ;;  %v1517_v14 = vrot.slane %v1514_v27, 1 }
 0x229   : > { %v1521_v30 = vsel %vm1519_vm15, %v1516_v26, %v1518_v34  ;;  %v1520_v41 = vsel %vm1519_vm15, %v1514_v27, %v1517_v14 }
 0x22a   : > { %v1535_v35 = vpop.permute.xlu1 %1534  ;;  %v1533_v16 = vpop.permute.xlu0 %1532  ;;  %v1525_v48 = vadd.f32 %v1521_v30, %v1506_v42  ;;  %v1524_v49 = vadd.f32 %v1520_v41, %v1505_v62 }
 0x22b   : > { %v1537_v38 = vrot.slane %v1535_v35, 1  ;;  %v1536_v39 = vrot.slane %v1533_v16, 1 }
 0x22d   : > { %v1540_v45 = vsel %vm1538_vm1, %v1535_v35, %v1537_v38  ;;  %v1539_v44 = vsel %vm1538_vm1, %v1533_v16, %v1536_v39 }
 0x22e   : > { %v1554_v63 = vpop.permute.xlu1 %1553  ;;  %v1552_v43 = vpop.permute.xlu0 %1551  ;;  %v1544_v55 = vadd.f32 %v1540_v45, %v1525_v48  ;;  %v1543_v51 = vadd.f32 %v1539_v44, %v1524_v49 }
 0x22f   : > { %v1556_v46 = vrot.slane %v1554_v63, 1  ;;  %v1555_v47 = vrot.slane %v1552_v43, 1 }
 0x231   : > { %v1559_v50 = vsel %vm1557_vm2, %v1554_v63, %v1556_v46  ;;  %v1558_v54 = vsel %vm1557_vm2, %v1552_v43, %v1555_v47 }
 0x232   : > { %v1573_v52 = vpop.permute.xlu1 %1572  ;;  %v1571_v53 = vpop.permute.xlu0 %1570  ;;  %v1563_v2 = vadd.f32 %v1559_v50, %v1544_v55  ;;  %v1562_v19 = vadd.f32 %v1558_v54, %v1543_v51 }
 0x233   : > { %v1575_v10 = vrot.slane %v1573_v52, 1  ;;  %v1574_v58 = vrot.slane %v1571_v53, 1 }
 0x235   : > { %v1578_v3 = vsel %vm1576_vm3, %v1573_v52, %v1575_v10  ;;  %v1577_v11 = vsel %vm1576_vm3, %v1571_v53, %v1574_v58 }
 0x236   : > { %v1582_v12 = vadd.f32 %v1578_v3, %v1563_v2  ;;  %v1581_v13 = vadd.f32 %v1577_v11, %v1562_v19 }
 0x238   : > { %1584 = vst.msk [vmem:[%s659_s26 + $0x4] sm:$0xf] %vm2970_vm0, %v1582_v12  ;;  %1583 = vst.msk [vmem:[%s659_s26] sm:$0xf] %vm2970_vm0, %v1581_v13 }
 0x239   : > { %2157 = shalt.err (!%p2154_p0)
}
 0x23a   : > { %s2158_s23 = scalar_lea.hbm %s3284_s19, 128  ;;  %s2162_s13 = scalar_lea.hbm %s3342_s3, 512 }
 0x23b   : > { %p2159_p7 = scmp.ne.s32.totalorder %s3284_s19, %s2158_s23  ;;  %p2163_p13 = scmp.lt.u32.totalorder %s3284_s19, %s3342_s3 }
 0x23c   : > { %p2164_p4 = scmp.lt.u32.totalorder %s2162_s13, %s2158_s23  ;;  %p2166_p1 = scmp.lt.u32.totalorder %s2158_s23, %s3284_s19 }
 0x23d   : > { %p2160_p3 = pnand %p2159_p7, %p3377_p2 }
 0x23e   : > { %p2165_p5 = por %p2164_p4, %p2163_p13 }
 0x23f   : > { %p2161_p8 = pneg %p2160_p3 }
 0x240   : > { %p2167_p6 = por %p2166_p1, %p2165_p5 }
 0x242   : > { %p2168_p9 = pnand %p2167_p6, %p2161_p8 }
 0x244   : > { %2171 = shalt.err (!%p2168_p9)
}
 0x245   : > { %s2407_s0 = smov 64   ;;  %s2408_s11 = smov 256  }
 0x246   : > { %s2409_s20 = smov 4  }
 0x247   : > { %1887 = dma.vmem_to_hbm [thread:$0]  (%p3377_p2), %s3279_s21, 128, %s3284_s19, %s3292_s18, %s2407_s0, %s2408_s11, %s2409_s20  }
 0x248 PF: > { %s3378_s8 = sld [smem:[#allocation15_spill]]  ;;  %p1899_p10 = scmp.ge.s32.totalorder %s2290_s17, 2 }
 0x249   : > { %s1614_s16 = sand.u32 1, %s2270_s12  }
 0x24a   : > { %s1615_s10 = scalar_lea.sflag [#allocation4], %s1614_s16 }
 0x24e   : > { %p3379_p11 = scmp.ne.s32.totalorder %s3378_s8, 0 }
 0x250   : > { %p1894_p12 = pnand %p1899_p10, %p3379_p11 }
 0x252   : > { %2265 = dma.done.wait (!%p1894_p12), %s1615_s10, 128  }
 0x253   : > { %2267 = vsyncadd (!%p1894_p12), %s1615_s10, 4294967168  ;;  %s3380_s17 = sld [smem:[#allocation12_spill]]  ;;  %s3381_s6 = sld [smem:[#allocation14_spill]] }
 0x254   : > { %s3382_s26 = sld [smem:[#allocation11_spill]]  ;;  %s3383_s16 = sld [smem:[#allocation13_spill]] }
 0x255   : > { %s3384_s12 = smov %s2282_s15  ;;  %s3385_s13 = smov %s2278_s14 }
 0x259   : > { %p14_p0 = scmp.ge.s32.totalorder %s3380_s17, 6   ;;  %s3386_s14 = smov %s3381_s6 }
 0x25a   : > { %s3387_s15 = smov %s3382_s26 }
 0x25b   :  { %16 = sbr.rel (!%p14_p0) target bundleno = 8 (0x8), region = 247 }
 0x262   :  { %1620 = vsyncpa [#allocation4], 1 }
 0x263   :  { %1622 = vsyncpa [#allocation4 + $0x1], 1 }
 0x264   :  { %1623 = vsyncpa [#allocation5], 1 }
 0x265   :  { %1625 = vsyncpa [#allocation5 + $0x1], 1 }

</bundles_post_ra>
